<compile_context>
chip_gen: v6e
topology: v6e:2x2x1
jax: 0.10.0
libtpu: 0.0.40
codegen_flags: <defaults>
</compile_context>

<pallas_src>
import jax
import jax.numpy as jnp
from jax import lax
from jax.experimental import pallas as pl
from jax.experimental.pallas import tpu as pltpu

# Use a single im2col matmul only while 9*C fits a single MXU contraction pass;
# beyond that, per-tap accumulating dots avoid the 9x duplicated patch matrix.
_IM2COL_MAX_K = 128


def _silu(a):
    return a * jax.nn.sigmoid(a)


def _conv3x3(pad_ref, w_ref, H, W, C, *, nt):
    """3x3 'same' conv as MXU matmuls over the zero-padded (H+2, W+2, C) scratch.

    nt=False: w_ref is (9*C, Cout)  -> returns (H*W, Cout) f32
    nt=True : w_ref is (Cout, 9*C)  -> returns (Cout, H*W) f32 (lane-dense)
    Small 9*C -> one im2col matmul; large 9*C -> nine accumulating K=C dots.
    """
    taps = [(dh, dw) for dh in range(3) for dw in range(3)]
    if 9 * C <= _IM2COL_MAX_K:
        cols = [pad_ref[dh:dh + H, dw:dw + W, :C].reshape(H * W, C)
                for dh, dw in taps]
        patches = jnp.concatenate(cols, axis=1)               # (H*W, 9*C), matmul dtype
        if nt:
            return lax.dot_general(w_ref[...], patches,
                                   (((1,), (1,)), ((), ())),
                                   preferred_element_type=jnp.float32)
        return jnp.dot(patches, w_ref[...], preferred_element_type=jnp.float32)

    acc = None
    for t, (dh, dw) in enumerate(taps):
        x_tap = pad_ref[dh:dh + H, dw:dw + W, :C].reshape(H * W, C)
        if nt:
            w_tap = w_ref[:, t * C:(t + 1) * C]                # (Cout, C)
            d = lax.dot_general(w_tap, x_tap, (((1,), (1,)), ((), ())),
                                preferred_element_type=jnp.float32)
        else:
            w_tap = w_ref[t * C:(t + 1) * C, :]                # (C, Cout)
            d = jnp.dot(x_tap, w_tap, preferred_element_type=jnp.float32)
        acc = d if acc is None else acc + d
    return acc


def _groupnorm1(h, n_elems, gamma, beta):
    """GroupNorm(num_groups=1): two-pass (mean, then centered variance), f32."""
    mean = jnp.sum(h) / n_elems
    centered = h - mean
    var = jnp.sum(centered * centered) / n_elems
    inv = lax.rsqrt(var + 1e-5)
    return centered * inv * gamma + beta


def down_kernel(xq_ref, w1_ref, b1_ref, g1_ref, bt1_ref,
                w2t_ref, b2_ref, g2_ref, bt2_ref,
                out_ref, pad_ref):
    # Per grid step: one sample.  xq_ref: (1, 4, H, W, Cin) where axis 1
    # enumerates the 2x2 max-pool window.  out_ref: (1, Cout, H*W).
    H = xq_ref.shape[2]
    W = xq_ref.shape[3]
    Cin = xq_ref.shape[4]
    Cout = out_ref.shape[1]
    Cpad = pad_ref.shape[2]
    cdt = pad_ref.dtype                       # MXU operand dtype (f32 or bf16)
    n_elems = float(H * W * Cout)             # GN(groups=1) normalizes over C*H*W

    # --- MaxPool2d(2,2): four plain (non-strided) reads of the quad block ----
    pooled = jnp.maximum(jnp.maximum(xq_ref[0, 0], xq_ref[0, 1]),
                         jnp.maximum(xq_ref[0, 2], xq_ref[0, 3]))  # (H, W, Cin)

    # --- zero only the 1-pixel border of the shared padded scratch -----------
    # Interior is fully overwritten below; border re-zeroed per step so the
    # kernel stays correct when the parallel batch axis is split across TCs.
    zrow = jnp.zeros((1, W + 2, Cpad), cdt)
    zcol = jnp.zeros((H, 1, Cpad), cdt)
    pad_ref[0:1, :, :] = zrow
    pad_ref[H + 1:H + 2, :, :] = zrow
    pad_ref[1:H + 1, 0:1, :] = zcol
    pad_ref[1:H + 1, W + 1:W + 2, :] = zcol

    # --- Conv1 (3x3, zero pad 1) + bias + SiLU + GroupNorm --------------------
    pad_ref[1:H + 1, 1:W + 1, :Cin] = pooled
    h1 = _conv3x3(pad_ref, w1_ref, H, W, Cin, nt=False)          # (H*W, Cout) f32
    h1 = _silu(h1 + b1_ref[...])
    h1 = _groupnorm1(h1, n_elems, g1_ref[...], bt1_ref[...])

    # --- Conv2 (3x3, zero pad 1) in NT form -> (Cout, H*W), lane-dense --------
    # NOTE: stale channels between Cin and Cout in the scratch are never read
    # (each conv only touches :C of its own pass); border is re-zeroed above.
    pad_ref[1:H + 1, 1:W + 1, :Cout] = h1.reshape(H, W, Cout).astype(cdt)
    h2 = _conv3x3(pad_ref, w2t_ref, H, W, Cout, nt=True)         # (Cout, H*W) f32
    h2 = _silu(h2 + b2_ref[...])
    h2 = _groupnorm1(h2, n_elems, g2_ref[...], bt2_ref[...])

    out_ref[0] = h2.astype(out_ref.dtype)


def down_forward(x_nchw, params, *, matmul_dtype=jnp.bfloat16, out_dtype=None):
    """Forward pass of `Down`. x_nchw: (N, Cin, H0, W0) -> (N, Cout, H0//2, W0//2).

    matmul_dtype: MXU operand dtype (bf16 default; f32 for strict validation).
    Accumulation / SiLU / GroupNorm always run in f32.
    out_dtype: output dtype (defaults to matmul_dtype).
    """
    w1, b1, g1, bt1, w2, b2, g2, bt2 = params
    N, Cin, H0, W0 = x_nchw.shape
    Cout = w1.shape[0]
    H, W = H0 // 2, W0 // 2
    Cmax = max(Cin, Cout)
    out_dtype = matmul_dtype if out_dtype is None else out_dtype

    # Cast upstream so the repack transpose, the input DMA and the scratch all
    # run at matmul width (halves HBM/VMEM traffic when matmul_dtype=bf16).
    x = x_nchw.astype(matmul_dtype)
    # Single layout transform: (N, Cin, 2H, 2W) -> (N, 4, H, W, Cin); axis 1
    # enumerates the 2x2 pooling window.  One input array => one DMA/sample.
    xq = (x.reshape(N, Cin, H, 2, W, 2)
           .transpose(0, 3, 5, 2, 4, 1)
           .reshape(N, 4, H, W, Cin))

    # im2col weights: w1 as (9*Cin, Cout); w2 pre-transposed as (Cout, 9*Cout).
    w1_mat = jnp.transpose(w1, (2, 3, 1, 0)).reshape(9 * Cin, Cout).astype(matmul_dtype)
    w2t_mat = jnp.transpose(w2, (0, 2, 3, 1)).reshape(Cout, 9 * Cout).astype(matmul_dtype)
    row = lambda v: v.reshape(1, -1).astype(jnp.float32)
    col = lambda v: v.reshape(-1, 1).astype(jnp.float32)
    b1r, g1r, bt1r = row(b1), row(g1), row(bt1)
    b2c, g2c, bt2c = col(b2), col(g2), col(bt2)

    full = lambda a: pl.BlockSpec(a.shape, lambda n, _nd=a.ndim: (0,) * _nd)

    # Explicit VMEM budget: 2x double-buffered in/out blocks + weights + scratch
    # + headroom for f32 activations/accumulators; never below the 32 MiB
    # default, capped below v7x's 64 MiB physical VMEM.
    isz = jnp.dtype(matmul_dtype).itemsize
    osz = jnp.dtype(out_dtype).itemsize
    in_blk = 4 * H * W * Cin * isz
    out_blk = Cout * H * W * osz
    wts = int(w1_mat.size) * isz + int(w2t_mat.size) * isz
    scratch = (H + 2) * (W + 2) * Cmax * isz
    headroom = 4 * (H * W * Cout * 4)
    vmem_need = 2 * in_blk + 2 * out_blk + wts + scratch + headroom
    vmem_limit = int(min(max(2 * vmem_need, 32 << 20), 60 << 20))

    cost = pl.CostEstimate(
        flops=int(2 * N * H * W * 9 * (Cin * Cout + Cout * Cout)),
        transcendentals=int(2 * N * H * W * Cout),
        bytes_accessed=int(4 * N * H * W * Cin * isz + wts
                           + N * Cout * H * W * osz))

    out_flat = pl.pallas_call(
        down_kernel,
        out_shape=jax.ShapeDtypeStruct((N, Cout, H * W), out_dtype),
        grid_spec=pltpu.PrefetchScalarGridSpec(
            num_scalar_prefetch=0,
            grid=(N,),
            in_specs=[pl.BlockSpec((1, 4, H, W, Cin), lambda n: (n, 0, 0, 0, 0)),
                      full(w1_mat), full(b1r), full(g1r), full(bt1r),
                      full(w2t_mat), full(b2c), full(g2c), full(bt2c)],
            out_specs=pl.BlockSpec((1, Cout, H * W), lambda n: (n, 0, 0)),
            scratch_shapes=[pltpu.VMEM((H + 2, W + 2, Cmax), matmul_dtype)]),
        compiler_params=pltpu.CompilerParams(
            dimension_semantics=("parallel",),
            vmem_limit_bytes=vmem_limit),
        cost_estimate=cost,
    )(xq, w1_mat, b1r, g1r, bt1r, w2t_mat, b2c, g2c, bt2c)

    # (N, Cout, H*W) -> (N, Cout, H, W): pure view reshape, already NCHW.
    return out_flat.reshape(N, Cout, H, W)


def down_reference(x, params):
    """Pure-JAX (XLA) reference mirroring the PyTorch module, for validation."""
    w1, b1, g1, bt1, w2, b2, g2, bt2 = params
    y = jax.lax.reduce_window(x, -jnp.inf, jax.lax.max,
                              (1, 1, 2, 2), (1, 1, 2, 2), 'VALID')

    def conv(z, w, b):
        o = jax.lax.conv_general_dilated(
            z, w, (1, 1), ((1, 1), (1, 1)),
            dimension_numbers=('NCHW', 'OIHW', 'NCHW'))
        return o + b[None, :, None, None]

    def gn(z, g, bt):
        mean = jnp.mean(z, axis=(1, 2, 3), keepdims=True)
        var = jnp.mean((z - mean) ** 2, axis=(1, 2, 3), keepdims=True)
        return (z - mean) / jnp.sqrt(var + 1e-5) * g[None, :, None, None] \
            + bt[None, :, None, None]

    y = gn(jax.nn.silu(conv(y, w1, b1)), g1, bt1)
    y = gn(jax.nn.silu(conv(y, w2, b2)), g2, bt2)
    return y


if __name__ == "__main__":
    key = jax.random.PRNGKey(0)

    def make_params(k, Cin, Cout):
        ks = jax.random.split(k, 8)
        w1 = 0.2 * jax.random.normal(ks[0], (Cout, Cin, 3, 3), jnp.float32)
        b1 = 0.1 * jax.random.normal(ks[1], (Cout,), jnp.float32)
        g1 = 1.0 + 0.1 * jax.random.normal(ks[2], (Cout,), jnp.float32)
        bt1 = 0.1 * jax.random.normal(ks[3], (Cout,), jnp.float32)
        w2 = 0.2 * jax.random.normal(ks[4], (Cout, Cout, 3, 3), jnp.float32)
        b2 = 0.1 * jax.random.normal(ks[5], (Cout,), jnp.float32)
        g2 = 1.0 + 0.1 * jax.random.normal(ks[6], (Cout,), jnp.float32)
        bt2 = 0.1 * jax.random.normal(ks[7], (Cout,), jnp.float32)
        return (w1, b1, g1, bt1, w2, b2, g2, bt2)

    k_x1, k_p1, k_x2, k_p2 = jax.random.split(key, 4)

    # Case 1: toy channels (9*C <= 128 -> single im2col matmul path), strict f32.
    N, Cin, Cout, H0, W0 = 2, 4, 8, 16, 16
    x1 = jax.random.normal(k_x1, (N, Cin, H0, W0), jnp.float32)
    p1 = make_params(k_p1, Cin, Cout)
    out1 = jax.block_until_ready(
        down_forward(x1, p1, matmul_dtype=jnp.float32, out_dtype=jnp.float32))
    ref1 = jax.block_until_ready(down_reference(x1, p1))
    assert out1.shape == (N, Cout, H0 // 2, W0 // 2), out1.shape
    err1 = float(jnp.max(jnp.abs(out1 - ref1)))
    assert err1 < 1e-3, f"case1 (im2col path, f32) max abs err {err1}"

    # Case 2: wider channels (9*C > 128 -> per-tap accumulating-dot path), f32.
    N2, Cin2, Cout2, H2, W2 = 2, 16, 32, 16, 16
    x2 = jax.random.normal(k_x2, (N2, Cin2, H2, W2), jnp.float32)
    p2 = make_params(k_p2, Cin2, Cout2)
    out2 = jax.block_until_ready(
        down_forward(x2, p2, matmul_dtype=jnp.float32, out_dtype=jnp.float32))
    ref2 = jax.block_until_ready(down_reference(x2, p2))
    assert out2.shape == (N2, Cout2, H2 // 2, W2 // 2), out2.shape
    err2 = float(jnp.max(jnp.abs(out2 - ref2)))
    assert err2 < 1e-3, f"case2 (per-tap path, f32) max abs err {err2}"

    # Case 3: production default — bf16 MXU operands (f32 accumulate/GN),
    # bf16 output.  bf16 cannot meet 1e-3, so check a loose sanity bound only.
    out3 = jax.block_until_ready(down_forward(x1, p1))   # bf16/bf16 defaults
    err3 = float(jnp.max(jnp.abs(out3.astype(jnp.float32) - ref1)))
    assert err3 < 1e-1, f"case3 (bf16 operands) max abs err {err3}"

    print("KERNEL_OK")
</pallas_src>

<mosaic_0001>
module attributes {stable_mosaic.version = 11 : i64} {
  func.func @down_kernel(%arg0: i32, %arg1: memref<1x4x8x8x4xf32, #tpu.memory_space<vmem>>, %arg2: memref<36x8xf32, #tpu.memory_space<vmem>>, %arg3: memref<1x8xf32, #tpu.memory_space<vmem>>, %arg4: memref<1x8xf32, #tpu.memory_space<vmem>>, %arg5: memref<1x8xf32, #tpu.memory_space<vmem>>, %arg6: memref<8x72xf32, #tpu.memory_space<vmem>>, %arg7: memref<8x1xf32, #tpu.memory_space<vmem>>, %arg8: memref<8x1xf32, #tpu.memory_space<vmem>>, %arg9: memref<8x1xf32, #tpu.memory_space<vmem>>, %arg10: memref<1x8x64xf32, #tpu.memory_space<vmem>>, %arg11: memref<10x10x8xf32, #tpu.memory_space<vmem>>) attributes {dimension_semantics = [#tpu.dimension_semantics<parallel>], iteration_bounds = array<i64: 2>, scalar_prefetch = 0 : i64, scratch_operands = 1 : i64, tpu.core_type = #tpu.core_type<tc>, window_params = [{transform_indices = @transform_0, window_bounds = array<i64: 1, 4, 8, 8, 4>}, {pipeline_mode = #tpu.pipeline_mode<synchronous>, transform_indices = @transform_1, window_bounds = array<i64: 36, 8>}, {pipeline_mode = #tpu.pipeline_mode<synchronous>, transform_indices = @transform_2, window_bounds = array<i64: 1, 8>}, {pipeline_mode = #tpu.pipeline_mode<synchronous>, transform_indices = @transform_3, window_bounds = array<i64: 1, 8>}, {pipeline_mode = #tpu.pipeline_mode<synchronous>, transform_indices = @transform_4, window_bounds = array<i64: 1, 8>}, {pipeline_mode = #tpu.pipeline_mode<synchronous>, transform_indices = @transform_5, window_bounds = array<i64: 8, 72>}, {pipeline_mode = #tpu.pipeline_mode<synchronous>, transform_indices = @transform_6, window_bounds = array<i64: 8, 1>}, {pipeline_mode = #tpu.pipeline_mode<synchronous>, transform_indices = @transform_7, window_bounds = array<i64: 8, 1>}, {pipeline_mode = #tpu.pipeline_mode<synchronous>, transform_indices = @transform_8, window_bounds = array<i64: 8, 1>}, {transform_indices = @transform_9, window_bounds = array<i64: 1, 8, 64>}]} {
    %c0 = arith.constant 0 : index
    %c0_0 = arith.constant 0 : index
    %c0_1 = arith.constant 0 : index
    %c0_2 = arith.constant 0 : index
    %c0_3 = arith.constant 0 : index
    %0 = vector.load %arg1[%c0, %c0_0, %c0_1, %c0_2, %c0_3] : memref<1x4x8x8x4xf32, #tpu.memory_space<vmem>>, vector<1x1x8x8x4xf32>
    %1 = vector.shape_cast %0 : vector<1x1x8x8x4xf32> to vector<8x8x4xf32>
    %c0_4 = arith.constant 0 : index
    %c1 = arith.constant 1 : index
    %c0_5 = arith.constant 0 : index
    %c0_6 = arith.constant 0 : index
    %c0_7 = arith.constant 0 : index
    %2 = vector.load %arg1[%c0_4, %c1, %c0_5, %c0_6, %c0_7] : memref<1x4x8x8x4xf32, #tpu.memory_space<vmem>>, vector<1x1x8x8x4xf32>
    %3 = vector.shape_cast %2 : vector<1x1x8x8x4xf32> to vector<8x8x4xf32>
    %4 = arith.maximumf %1, %3 : vector<8x8x4xf32>
    %c0_8 = arith.constant 0 : index
    %c2 = arith.constant 2 : index
    %c0_9 = arith.constant 0 : index
    %c0_10 = arith.constant 0 : index
    %c0_11 = arith.constant 0 : index
    %5 = vector.load %arg1[%c0_8, %c2, %c0_9, %c0_10, %c0_11] : memref<1x4x8x8x4xf32, #tpu.memory_space<vmem>>, vector<1x1x8x8x4xf32>
    %6 = vector.shape_cast %5 : vector<1x1x8x8x4xf32> to vector<8x8x4xf32>
    %c0_12 = arith.constant 0 : index
    %c3 = arith.constant 3 : index
    %c0_13 = arith.constant 0 : index
    %c0_14 = arith.constant 0 : index
    %c0_15 = arith.constant 0 : index
    %7 = vector.load %arg1[%c0_12, %c3, %c0_13, %c0_14, %c0_15] : memref<1x4x8x8x4xf32, #tpu.memory_space<vmem>>, vector<1x1x8x8x4xf32>
    %8 = vector.shape_cast %7 : vector<1x1x8x8x4xf32> to vector<8x8x4xf32>
    %9 = arith.maximumf %6, %8 : vector<8x8x4xf32>
    %10 = arith.maximumf %4, %9 : vector<8x8x4xf32>
    %cst = arith.constant 0.000000e+00 : f32
    %11 = vector.broadcast %cst : f32 to vector<1x10x8xf32>
    %cst_16 = arith.constant 0.000000e+00 : f32
    %12 = vector.broadcast %cst_16 : f32 to vector<8x1x8xf32>
    %c0_17 = arith.constant 0 : index
    %c0_18 = arith.constant 0 : index
    %c0_19 = arith.constant 0 : index
    %13 = vector.load %arg11[%c0_17, %c0_18, %c0_19] : memref<10x10x8xf32, #tpu.memory_space<vmem>>, vector<1x10x8xf32>
    tpu.vector_store %arg11[%c0_17, %c0_18, %c0_19], %11 {strides = array<i32>} : memref<10x10x8xf32, #tpu.memory_space<vmem>>, vector<1x10x8xf32>,
    %c9 = arith.constant 9 : index
    %c0_20 = arith.constant 0 : index
    %c0_21 = arith.constant 0 : index
    %14 = vector.load %arg11[%c9, %c0_20, %c0_21] : memref<10x10x8xf32, #tpu.memory_space<vmem>>, vector<1x10x8xf32>
    tpu.vector_store %arg11[%c9, %c0_20, %c0_21], %11 {strides = array<i32>} : memref<10x10x8xf32, #tpu.memory_space<vmem>>, vector<1x10x8xf32>,
    %c1_22 = arith.constant 1 : index
    %c0_23 = arith.constant 0 : index
    %c0_24 = arith.constant 0 : index
    %15 = vector.load %arg11[%c1_22, %c0_23, %c0_24] : memref<10x10x8xf32, #tpu.memory_space<vmem>>, vector<8x1x8xf32>
    tpu.vector_store %arg11[%c1_22, %c0_23, %c0_24], %12 {strides = array<i32>} : memref<10x10x8xf32, #tpu.memory_space<vmem>>, vector<8x1x8xf32>,
    %c1_25 = arith.constant 1 : index
    %c9_26 = arith.constant 9 : index
    %c0_27 = arith.constant 0 : index
    %16 = vector.load %arg11[%c1_25, %c9_26, %c0_27] : memref<10x10x8xf32, #tpu.memory_space<vmem>>, vector<8x1x8xf32>
    tpu.vector_store %arg11[%c1_25, %c9_26, %c0_27], %12 {strides = array<i32>} : memref<10x10x8xf32, #tpu.memory_space<vmem>>, vector<8x1x8xf32>,
    %c1_28 = arith.constant 1 : index
    %c1_29 = arith.constant 1 : index
    %c0_30 = arith.constant 0 : index
    %17 = vector.load %arg11[%c1_28, %c1_29, %c0_30] : memref<10x10x8xf32, #tpu.memory_space<vmem>>, vector<8x8x4xf32>
    tpu.vector_store %arg11[%c1_28, %c1_29, %c0_30], %10 {strides = array<i32>} : memref<10x10x8xf32, #tpu.memory_space<vmem>>, vector<8x8x4xf32>,
    %c0_31 = arith.constant 0 : index
    %c0_32 = arith.constant 0 : index
    %c0_33 = arith.constant 0 : index
    %18 = vector.load %arg11[%c0_31, %c0_32, %c0_33] : memref<10x10x8xf32, #tpu.memory_space<vmem>>, vector<8x8x4xf32>
    %19 = vector.shape_cast %18 : vector<8x8x4xf32> to vector<64x4xf32>
    %c0_34 = arith.constant 0 : index
    %c1_35 = arith.constant 1 : index
    %c0_36 = arith.constant 0 : index
    %20 = vector.load %arg11[%c0_34, %c1_35, %c0_36] : memref<10x10x8xf32, #tpu.memory_space<vmem>>, vector<8x8x4xf32>
    %21 = vector.shape_cast %20 : vector<8x8x4xf32> to vector<64x4xf32>
    %c0_37 = arith.constant 0 : index
    %c2_38 = arith.constant 2 : index
    %c0_39 = arith.constant 0 : index
    %22 = vector.load %arg11[%c0_37, %c2_38, %c0_39] : memref<10x10x8xf32, #tpu.memory_space<vmem>>, vector<8x8x4xf32>
    %23 = vector.shape_cast %22 : vector<8x8x4xf32> to vector<64x4xf32>
    %c1_40 = arith.constant 1 : index
    %c0_41 = arith.constant 0 : index
    %c0_42 = arith.constant 0 : index
    %24 = vector.load %arg11[%c1_40, %c0_41, %c0_42] : memref<10x10x8xf32, #tpu.memory_space<vmem>>, vector<8x8x4xf32>
    %25 = vector.shape_cast %24 : vector<8x8x4xf32> to vector<64x4xf32>
    %c1_43 = arith.constant 1 : index
    %c1_44 = arith.constant 1 : index
    %c0_45 = arith.constant 0 : index
    %26 = vector.load %arg11[%c1_43, %c1_44, %c0_45] : memref<10x10x8xf32, #tpu.memory_space<vmem>>, vector<8x8x4xf32>
    %27 = vector.shape_cast %26 : vector<8x8x4xf32> to vector<64x4xf32>
    %c1_46 = arith.constant 1 : index
    %c2_47 = arith.constant 2 : index
    %c0_48 = arith.constant 0 : index
    %28 = vector.load %arg11[%c1_46, %c2_47, %c0_48] : memref<10x10x8xf32, #tpu.memory_space<vmem>>, vector<8x8x4xf32>
    %29 = vector.shape_cast %28 : vector<8x8x4xf32> to vector<64x4xf32>
    %c2_49 = arith.constant 2 : index
    %c0_50 = arith.constant 0 : index
    %c0_51 = arith.constant 0 : index
    %30 = vector.load %arg11[%c2_49, %c0_50, %c0_51] : memref<10x10x8xf32, #tpu.memory_space<vmem>>, vector<8x8x4xf32>
    %31 = vector.shape_cast %30 : vector<8x8x4xf32> to vector<64x4xf32>
    %c2_52 = arith.constant 2 : index
    %c1_53 = arith.constant 1 : index
    %c0_54 = arith.constant 0 : index
    %32 = vector.load %arg11[%c2_52, %c1_53, %c0_54] : memref<10x10x8xf32, #tpu.memory_space<vmem>>, vector<8x8x4xf32>
    %33 = vector.shape_cast %32 : vector<8x8x4xf32> to vector<64x4xf32>
    %c2_55 = arith.constant 2 : index
    %c2_56 = arith.constant 2 : index
    %c0_57 = arith.constant 0 : index
    %34 = vector.load %arg11[%c2_55, %c2_56, %c0_57] : memref<10x10x8xf32, #tpu.memory_space<vmem>>, vector<8x8x4xf32>
    %35 = vector.shape_cast %34 : vector<8x8x4xf32> to vector<64x4xf32>
    %36 = tpu.concatenate %19, %21, %23, %25, %27, %29, %31, %33, %35 in 1 : vector<64x4xf32>, vector<64x4xf32>, vector<64x4xf32>, vector<64x4xf32>, vector<64x4xf32>, vector<64x4xf32>, vector<64x4xf32>, vector<64x4xf32>, vector<64x4xf32> -> vector<64x36xf32>
    %c0_58 = arith.constant 0 : index
    %c0_59 = arith.constant 0 : index
    %37 = vector.load %arg2[%c0_58, %c0_59] : memref<36x8xf32, #tpu.memory_space<vmem>>, vector<36x8xf32>
    %cst_60 = arith.constant dense<0.000000e+00> : vector<64x8xf32>
    %38 = tpu.matmul %36, %37, %cst_60 {dimension_numbers = #tpu.dot_dimension_numbers<[1], [0], [0], [1], [0, 0, 1, 1], [], []>} : vector<64x36xf32>, vector<36x8xf32>, vector<64x8xf32> -> vector<64x8xf32>
    %c0_61 = arith.constant 0 : index
    %c0_62 = arith.constant 0 : index
    %39 = vector.load %arg3[%c0_61, %c0_62] : memref<1x8xf32, #tpu.memory_space<vmem>>, vector<1x8xf32>
    %40 = vector.broadcast %39 : vector<1x8xf32> to vector<64x8xf32>
    %41 = arith.addf %38, %40 : vector<64x8xf32>
    %42 = arith.negf %41 : vector<64x8xf32>
    %43 = math.exp %42 : vector<64x8xf32>
    %cst_63 = arith.constant 1.000000e+00 : f32
    %44 = vector.broadcast %cst_63 : f32 to vector<64x8xf32>
    %45 = arith.addf %44, %43 : vector<64x8xf32>
    %46 = arith.divf %44, %45 : vector<64x8xf32>
    %47 = arith.mulf %41, %46 : vector<64x8xf32>
    %c0_64 = arith.constant 0 : index
    %c0_65 = arith.constant 0 : index
    %48 = vector.load %arg4[%c0_64, %c0_65] : memref<1x8xf32, #tpu.memory_space<vmem>>, vector<1x8xf32>
    %c0_66 = arith.constant 0 : index
    %c0_67 = arith.constant 0 : index
    %49 = vector.load %arg5[%c0_66, %c0_67] : memref<1x8xf32, #tpu.memory_space<vmem>>, vector<1x8xf32>
    %50 = vector.shape_cast %47 : vector<64x8xf32> to vector<1x64x8xf32>
    %cst_68 = arith.constant dense<0.000000e+00> : vector<1xf32>
    %51 = vector.multi_reduction <add>, %50, %cst_68 [1, 2] : vector<1x64x8xf32> to vector<1xf32>
    %52 = vector.shape_cast %51 : vector<1xf32> to vector<1x1x1xf32>
    %53 = vector.extract %52[0, 0, 0] : f32 from vector<1x1x1xf32>
    %cst_69 = arith.constant 5.120000e+02 : f32
    %54 = arith.divf %53, %cst_69 : f32
    %55 = vector.broadcast %54 : f32 to vector<64x8xf32>
    %56 = arith.subf %47, %55 : vector<64x8xf32>
    %57 = arith.mulf %56, %56 : vector<64x8xf32>
    %58 = vector.shape_cast %57 : vector<64x8xf32> to vector<1x64x8xf32>
    %cst_70 = arith.constant dense<0.000000e+00> : vector<1xf32>
    %59 = vector.multi_reduction <add>, %58, %cst_70 [1, 2] : vector<1x64x8xf32> to vector<1xf32>
    %60 = vector.shape_cast %59 : vector<1xf32> to vector<1x1x1xf32>
    %61 = vector.extract %60[0, 0, 0] : f32 from vector<1x1x1xf32>
    %cst_71 = arith.constant 5.120000e+02 : f32
    %62 = arith.divf %61, %cst_71 : f32
    %cst_72 = arith.constant 9.99999974E-6 : f32
    %63 = arith.addf %62, %cst_72 : f32
    %64 = math.rsqrt %63 : f32
    %65 = vector.broadcast %64 : f32 to vector<64x8xf32>
    %66 = arith.mulf %56, %65 : vector<64x8xf32>
    %67 = vector.broadcast %48 : vector<1x8xf32> to vector<64x8xf32>
    %68 = arith.mulf %66, %67 : vector<64x8xf32>
    %69 = vector.broadcast %49 : vector<1x8xf32> to vector<64x8xf32>
    %70 = arith.addf %68, %69 : vector<64x8xf32>
    %71 = vector.shape_cast %70 : vector<64x8xf32> to vector<8x8x8xf32>
    %c1_73 = arith.constant 1 : index
    %c1_74 = arith.constant 1 : index
    %c0_75 = arith.constant 0 : index
    %72 = vector.load %arg11[%c1_73, %c1_74, %c0_75] : memref<10x10x8xf32, #tpu.memory_space<vmem>>, vector<8x8x8xf32>
    tpu.vector_store %arg11[%c1_73, %c1_74, %c0_75], %71 {strides = array<i32>} : memref<10x10x8xf32, #tpu.memory_space<vmem>>, vector<8x8x8xf32>,
    %c0_76 = arith.constant 0 : index
    %c0_77 = arith.constant 0 : index
    %c0_78 = arith.constant 0 : index
    %73 = vector.load %arg11[%c0_76, %c0_77, %c0_78] : memref<10x10x8xf32, #tpu.memory_space<vmem>>, vector<8x8x8xf32>
    %74 = vector.shape_cast %73 : vector<8x8x8xf32> to vector<64x8xf32>
    %c0_79 = arith.constant 0 : index
    %c1_80 = arith.constant 1 : index
    %c0_81 = arith.constant 0 : index
    %75 = vector.load %arg11[%c0_79, %c1_80, %c0_81] : memref<10x10x8xf32, #tpu.memory_space<vmem>>, vector<8x8x8xf32>
    %76 = vector.shape_cast %75 : vector<8x8x8xf32> to vector<64x8xf32>
    %c0_82 = arith.constant 0 : index
    %c2_83 = arith.constant 2 : index
    %c0_84 = arith.constant 0 : index
    %77 = vector.load %arg11[%c0_82, %c2_83, %c0_84] : memref<10x10x8xf32, #tpu.memory_space<vmem>>, vector<8x8x8xf32>
    %78 = vector.shape_cast %77 : vector<8x8x8xf32> to vector<64x8xf32>
    %c1_85 = arith.constant 1 : index
    %c0_86 = arith.constant 0 : index
    %c0_87 = arith.constant 0 : index
    %79 = vector.load %arg11[%c1_85, %c0_86, %c0_87] : memref<10x10x8xf32, #tpu.memory_space<vmem>>, vector<8x8x8xf32>
    %80 = vector.shape_cast %79 : vector<8x8x8xf32> to vector<64x8xf32>
    %c1_88 = arith.constant 1 : index
    %c1_89 = arith.constant 1 : index
    %c0_90 = arith.constant 0 : index
    %81 = vector.load %arg11[%c1_88, %c1_89, %c0_90] : memref<10x10x8xf32, #tpu.memory_space<vmem>>, vector<8x8x8xf32>
    %82 = vector.shape_cast %81 : vector<8x8x8xf32> to vector<64x8xf32>
    %c1_91 = arith.constant 1 : index
    %c2_92 = arith.constant 2 : index
    %c0_93 = arith.constant 0 : index
    %83 = vector.load %arg11[%c1_91, %c2_92, %c0_93] : memref<10x10x8xf32, #tpu.memory_space<vmem>>, vector<8x8x8xf32>
    %84 = vector.shape_cast %83 : vector<8x8x8xf32> to vector<64x8xf32>
    %c2_94 = arith.constant 2 : index
    %c0_95 = arith.constant 0 : index
    %c0_96 = arith.constant 0 : index
    %85 = vector.load %arg11[%c2_94, %c0_95, %c0_96] : memref<10x10x8xf32, #tpu.memory_space<vmem>>, vector<8x8x8xf32>
    %86 = vector.shape_cast %85 : vector<8x8x8xf32> to vector<64x8xf32>
    %c2_97 = arith.constant 2 : index
    %c1_98 = arith.constant 1 : index
    %c0_99 = arith.constant 0 : index
    %87 = vector.load %arg11[%c2_97, %c1_98, %c0_99] : memref<10x10x8xf32, #tpu.memory_space<vmem>>, vector<8x8x8xf32>
    %88 = vector.shape_cast %87 : vector<8x8x8xf32> to vector<64x8xf32>
    %c2_100 = arith.constant 2 : index
    %c2_101 = arith.constant 2 : index
    %c0_102 = arith.constant 0 : index
    %89 = vector.load %arg11[%c2_100, %c2_101, %c0_102] : memref<10x10x8xf32, #tpu.memory_space<vmem>>, vector<8x8x8xf32>
    %90 = vector.shape_cast %89 : vector<8x8x8xf32> to vector<64x8xf32>
    %91 = tpu.concatenate %74, %76, %78, %80, %82, %84, %86, %88, %90 in 1 : vector<64x8xf32>, vector<64x8xf32>, vector<64x8xf32>, vector<64x8xf32>, vector<64x8xf32>, vector<64x8xf32>, vector<64x8xf32>, vector<64x8xf32>, vector<64x8xf32> -> vector<64x72xf32>
    %c0_103 = arith.constant 0 : index
    %c0_104 = arith.constant 0 : index
    %92 = vector.load %arg6[%c0_103, %c0_104] : memref<8x72xf32, #tpu.memory_space<vmem>>, vector<8x72xf32>
    %cst_105 = arith.constant dense<0.000000e+00> : vector<8x64xf32>
    %93 = tpu.matmul %92, %91, %cst_105 {dimension_numbers = #tpu.dot_dimension_numbers<[1], [1], [0], [0], [0, 0, 1, 0], [], []>} : vector<8x72xf32>, vector<64x72xf32>, vector<8x64xf32> -> vector<8x64xf32>
    %c0_106 = arith.constant 0 : index
    %c0_107 = arith.constant 0 : index
    %94 = vector.load %arg7[%c0_106, %c0_107] : memref<8x1xf32, #tpu.memory_space<vmem>>, vector<8x1xf32>
    %95 = vector.broadcast %94 : vector<8x1xf32> to vector<8x64xf32>
    %96 = arith.addf %93, %95 : vector<8x64xf32>
    %97 = arith.negf %96 : vector<8x64xf32>
    %98 = math.exp %97 : vector<8x64xf32>
    %cst_108 = arith.constant 1.000000e+00 : f32
    %99 = vector.broadcast %cst_108 : f32 to vector<8x64xf32>
    %100 = arith.addf %99, %98 : vector<8x64xf32>
    %101 = arith.divf %99, %100 : vector<8x64xf32>
    %102 = arith.mulf %96, %101 : vector<8x64xf32>
    %c0_109 = arith.constant 0 : index
    %c0_110 = arith.constant 0 : index
    %103 = vector.load %arg8[%c0_109, %c0_110] : memref<8x1xf32, #tpu.memory_space<vmem>>, vector<8x1xf32>
    %c0_111 = arith.constant 0 : index
    %c0_112 = arith.constant 0 : index
    %104 = vector.load %arg9[%c0_111, %c0_112] : memref<8x1xf32, #tpu.memory_space<vmem>>, vector<8x1xf32>
    %105 = vector.shape_cast %102 : vector<8x64xf32> to vector<1x8x64xf32>
    %cst_113 = arith.constant dense<0.000000e+00> : vector<1xf32>
    %106 = vector.multi_reduction <add>, %105, %cst_113 [1, 2] : vector<1x8x64xf32> to vector<1xf32>
    %107 = vector.shape_cast %106 : vector<1xf32> to vector<1x1x1xf32>
    %108 = vector.extract %107[0, 0, 0] : f32 from vector<1x1x1xf32>
    %cst_114 = arith.constant 5.120000e+02 : f32
    %109 = arith.divf %108, %cst_114 : f32
    %110 = vector.broadcast %109 : f32 to vector<8x64xf32>
    %111 = arith.subf %102, %110 : vector<8x64xf32>
    %112 = arith.mulf %111, %111 : vector<8x64xf32>
    %113 = vector.shape_cast %112 : vector<8x64xf32> to vector<1x8x64xf32>
    %cst_115 = arith.constant dense<0.000000e+00> : vector<1xf32>
    %114 = vector.multi_reduction <add>, %113, %cst_115 [1, 2] : vector<1x8x64xf32> to vector<1xf32>
    %115 = vector.shape_cast %114 : vector<1xf32> to vector<1x1x1xf32>
    %116 = vector.extract %115[0, 0, 0] : f32 from vector<1x1x1xf32>
    %cst_116 = arith.constant 5.120000e+02 : f32
    %117 = arith.divf %116, %cst_116 : f32
    %cst_117 = arith.constant 9.99999974E-6 : f32
    %118 = arith.addf %117, %cst_117 : f32
    %119 = math.rsqrt %118 : f32
    %120 = vector.broadcast %119 : f32 to vector<8x64xf32>
    %121 = arith.mulf %111, %120 : vector<8x64xf32>
    %122 = vector.broadcast %103 : vector<8x1xf32> to vector<8x64xf32>
    %123 = arith.mulf %121, %122 : vector<8x64xf32>
    %124 = vector.broadcast %104 : vector<8x1xf32> to vector<8x64xf32>
    %125 = arith.addf %123, %124 : vector<8x64xf32>
    %c0_118 = arith.constant 0 : index
    %c0_119 = arith.constant 0 : index
    %c0_120 = arith.constant 0 : index
    %126 = vector.load %arg10[%c0_118, %c0_119, %c0_120] : memref<1x8x64xf32, #tpu.memory_space<vmem>>, vector<1x8x64xf32>
    %127 = vector.shape_cast %126 : vector<1x8x64xf32> to vector<8x64xf32>
    %128 = vector.shape_cast %125 : vector<8x64xf32> to vector<1x8x64xf32>
    tpu.vector_store %arg10[%c0_118, %c0_119, %c0_120], %128 {strides = array<i32>} : memref<1x8x64xf32, #tpu.memory_space<vmem>>, vector<1x8x64xf32>,
    return
  }
  func.func @transform_0(%arg0: i32) -> (i32, i32, i32, i32, i32) {
    %c0_i32 = arith.constant 0 : i32
    %c0_i32_0 = arith.constant 0 : i32
    %c0_i32_1 = arith.constant 0 : i32
    %c0_i32_2 = arith.constant 0 : i32
    %c0_i32_3 = arith.constant 0 : i32
    return %arg0, %c0_i32, %c0_i32_0, %c0_i32_1, %c0_i32_2 : i32, i32, i32, i32, i32
  }
  func.func @transform_1(%arg0: i32) -> (i32, i32) {
    %c0_i32 = arith.constant 0 : i32
    %c0_i32_0 = arith.constant 0 : i32
    %c0_i32_1 = arith.constant 0 : i32
    return %c0_i32, %c0_i32_0 : i32, i32
  }
  func.func @transform_2(%arg0: i32) -> (i32, i32) {
    %c0_i32 = arith.constant 0 : i32
    %c0_i32_0 = arith.constant 0 : i32
    %c0_i32_1 = arith.constant 0 : i32
    return %c0_i32, %c0_i32_0 : i32, i32
  }
  func.func @transform_3(%arg0: i32) -> (i32, i32) {
    %c0_i32 = arith.constant 0 : i32
    %c0_i32_0 = arith.constant 0 : i32
    %c0_i32_1 = arith.constant 0 : i32
    return %c0_i32, %c0_i32_0 : i32, i32
  }
  func.func @transform_4(%arg0: i32) -> (i32, i32) {
    %c0_i32 = arith.constant 0 : i32
    %c0_i32_0 = arith.constant 0 : i32
    %c0_i32_1 = arith.constant 0 : i32
    return %c0_i32, %c0_i32_0 : i32, i32
  }
  func.func @transform_5(%arg0: i32) -> (i32, i32) {
    %c0_i32 = arith.constant 0 : i32
    %c0_i32_0 = arith.constant 0 : i32
    %c0_i32_1 = arith.constant 0 : i32
    return %c0_i32, %c0_i32_0 : i32, i32
  }
  func.func @transform_6(%arg0: i32) -> (i32, i32) {
    %c0_i32 = arith.constant 0 : i32
    %c0_i32_0 = arith.constant 0 : i32
    %c0_i32_1 = arith.constant 0 : i32
    return %c0_i32, %c0_i32_0 : i32, i32
  }
  func.func @transform_7(%arg0: i32) -> (i32, i32) {
    %c0_i32 = arith.constant 0 : i32
    %c0_i32_0 = arith.constant 0 : i32
    %c0_i32_1 = arith.constant 0 : i32
    return %c0_i32, %c0_i32_0 : i32, i32
  }
  func.func @transform_8(%arg0: i32) -> (i32, i32) {
    %c0_i32 = arith.constant 0 : i32
    %c0_i32_0 = arith.constant 0 : i32
    %c0_i32_1 = arith.constant 0 : i32
    return %c0_i32, %c0_i32_0 : i32, i32
  }
  func.func @transform_9(%arg0: i32) -> (i32, i32, i32) {
    %c0_i32 = arith.constant 0 : i32
    %c0_i32_0 = arith.constant 0 : i32
    %c0_i32_1 = arith.constant 0 : i32
    return %arg0, %c0_i32, %c0_i32_0 : i32, i32, i32
  }
}

</mosaic_0001>

<bundles_post_ra>
// kernel: tpu_custom_call.1
= control target key start
LH: loop header
LB: loop body
LE: loop exit
PB: predicated region body
PF: predicated region fallthrough
CT: control target
= control target key end

     0   :  { %14 = vsyncpa [#allocation4], 0  ;;  %s2744_s0 = inlined_call_operand.vmem [shape: f32[2,4,8,8,4], index: 0, kind: input, shape index: {}]   ;;  %s2745_s1 = inlined_call_operand.vmem [shape: f32[36,8], index: 1, kind: input, shape index: {}]   ;;  %s2746_s2 = inlined_call_operand.vmem [shape: f32[1,8], index: 2, kind: input, shape index: {}]   ;;  %s2747_s3 = inlined_call_operand.vmem [shape: f32[1,8], index: 3, kind: input, shape index: {}]   ;;  %s2748_s4 = inlined_call_operand.vmem [shape: f32[1,8], index: 4, kind: input, shape index: {}]   ;;  %s2749_s5 = inlined_call_operand.vmem [shape: f32[8,72], index: 5, kind: input, shape index: {}]   ;;  %s2750_s6 = inlined_call_operand.vmem [shape: f32[8,1], index: 6, kind: input, shape index: {}]   ;;  %s2751_s7 = inlined_call_operand.vmem [shape: f32[8,1], index: 7, kind: input, shape index: {}]   ;;  %s2752_s8 = inlined_call_operand.vmem [shape: f32[8,1], index: 8, kind: input, shape index: {}]   ;;  %s2753_s9 = inlined_call_operand.hbm [shape: f32[2,8,64], index: 9, kind: output, shape index: {}]  }
   0x1   :  { %16 = vsyncpa [#allocation4 + $0x1], 0  ;;  %s2144_s30 = smov 0   ;;  %s2146_s10 = smov 0  }
   0x2   :  { %s2148_s11 = smov 0   ;;  %s2150_s12 = smov 0  }
   0x3 LB: > { %s2165_s13 = sadd.s32 4294967295, %s2076_s12   ;;  %s1778_s14 = sadd.s32 4294967294, %s2076_s12   ;;  %s2076_s12 = sphi %s2150_s12, %s2771_s12   ;;  %s2072_s11 = sphi %s2148_s11, %s2770_s11   ;;  %s2068_s10 = sphi %s2146_s10, %s2769_s10   ;;  %s2064_s30 = sphi %s2144_s30, %s2768_s30  }
   0x4   : > { %s2169_s15 = sadd.s32 1, %s2076_s12   ;;  %s223_s16 = sadd.s32 1, %s2072_s11 }
   0x5   : > { %s220_s17 = ssub.s32 %s2076_s12, %s2169_s15  ;;  %p233_p0 = scmp.ne.s32.totalorder %s2072_s11, %s2068_s10 }
   0x6   : > { %p221_p1 = scmp.eq.s32.totalorder %s220_s17, 0  ;;  %p234_p2 = scmp.eq.s32.totalorder %s2165_s13, 1 }
   0x7   : > { %p239_p3 = scmp.ne.s32.totalorder %s2068_s10, %s2064_s30  ;;  %p240_p4 = scmp.eq.s32.totalorder %s1778_s14, 1 }
   0x8   : > { %s2180_s18 = scalar_select %p221_p1, %s2072_s11, %s223_s16  }
   0x9   : > { %p2182_p5 = por %p234_p2, %p233_p0  ;;  %p2186_p6 = por %p240_p4, %p239_p3 }
   0xa   : > { %p1781_p7 = scmp.ge.s32.totalorder %s2076_s12, 1  ;;  %p290_p8 = scmp.lt.s32.totalorder %s2076_s12, 3 }
   0xc   : > { %p291_p9 = pnand %p1781_p7, %p290_p8 }
   0xd   : > { %p326_p10 = scmp.lt.s32.totalorder (!%p291_p9), %s2165_s13, 1  ;;  %s2079_s26 = smov (!%p291_p9), 8  }
   0xe   : > { %294 = sbr.rel (%p291_p9) target bundleno = 1986 (0x7c2), region = 56  ;;  %s2080_s27 = smov (!%p291_p9), 4  }
   0xf   : > { %s2081_s28 = smov (!%p291_p9), 12   ;;  %s2082_s29 = smov (!%p291_p9), 16  }
  0x10   : > { %s2754_s14 = smov (!%p291_p9), 20   ;;  %s2086_s24 = smov (!%p291_p9), 32  }
  0x11   : > { %s2756_s17 = smov (!%p291_p9), 48   ;;  %s2089_s23 = smov (!%p291_p9), 64  }
  0x13   : > { %vm390_vm0 = vcmask 64512   ;;  %vm392_vm1 = vcmask 58368   ;;  %vm398_vm2 = vcmask 57344   ;;  %v2078_v0 = vmov 0.0   ;;  %s327_s21 = scalar_select %p326_p10, %s2165_s13, 1 }
  0x14   : > { %391 = vst.msk [vmem:[#allocation2] sm:$0xff] %vm390_vm0, %v2078_v0  ;;  %395 = vst.msk [vmem:[#allocation2 + $0x90] sm:$0xff] %vm390_vm0, %v2078_v0  ;;  %1888 = vmatprep.subr.mxu1 %v2078_v0  ;;  %vm415_vm3 = vcmask 31744   ;;  %vm860_vm4 = vcmask 1043456   ;;  %vm769_vm5 = vcmask 97280   ;;  %vm778_vm6 = vcmask 130048  }
  0x15   : > { %393 = vst.msk [vmem:[#allocation2 + $0x8] sm:$0x3] %vm392_vm1, %v2078_v0  ;;  %396 = vst.msk [vmem:[#allocation2 + $0x98] sm:$0x3] %vm392_vm1, %v2078_v0  ;;  %s1843_s22 = sshll.u32 %s327_s21, 8  ;;  %s2760_s21 = smov 24  }
  0x16   : > { %407 = vst.msk [vmem:[#allocation2 + $0x19] sm:$0x1] %vm398_vm2, %v2078_v0  ;;  %399 = vst.msk [vmem:[#allocation2 + $0x10] sm:$0x1] %vm398_vm2, %v2078_v0  ;;  %s2238_s25 = scalar_lea.vmem %s2744_s0, %s1843_s22  ;;  %vm787_vm7 = vcmask 162816   ;;  %vm796_vm8 = vcmask 195584  }
  0x17   : > { %400 = vst.msk [vmem:[#allocation2 + $0x20] sm:$0x1] %vm398_vm2, %v2078_v0  ;;  %401 = vst.msk [vmem:[#allocation2 + $0x30] sm:$0x1] %vm398_vm2, %v2078_v0  ;;  %v331_v1 = vld [vmem:[%s2238_s25] sm:$0xff]  ;;  %v332_v9 = vld [vmem:[%s2238_s25 + $0x8] sm:$0xff] }
  0x18   : > { %402 = vst.msk [vmem:[#allocation2 + $0x40] sm:$0x1] %vm398_vm2, %v2078_v0  ;;  %403 = vst.msk [vmem:[#allocation2 + $0x50] sm:$0x1] %vm398_vm2, %v2078_v0  ;;  %v1785_v2 = vld [vmem:[%s2238_s25 + $0x40] sm:$0xff]  ;;  %v1786_v10 = vld [vmem:[%s2238_s25 + $0x48] sm:$0xff] }
  0x19   : > { %404 = vst.msk [vmem:[#allocation2 + $0x60] sm:$0x1] %vm398_vm2, %v2078_v0  ;;  %405 = vst.msk [vmem:[#allocation2 + $0x70] sm:$0x1] %vm398_vm2, %v2078_v0  ;;  %v1793_v3 = vld [vmem:[%s2238_s25 + $0x80] sm:$0xff]  ;;  %v348_v6 = vmax.f32 %v331_v1, %v1785_v2  ;;  %v349_v11 = vmax.f32 %v332_v9, %v1786_v10  ;;  %v1794_v12 = vld [vmem:[%s2238_s25 + $0x88] sm:$0xff] }
  0x1a   : > { %406 = vst.msk [vmem:[#allocation2 + $0x80] sm:$0x1] %vm398_vm2, %v2078_v0  ;;  %408 = vst.msk [vmem:[#allocation2 + $0x29] sm:$0x1] %vm398_vm2, %v2078_v0  ;;  %v1801_v7 = vld [vmem:[%s2238_s25 + $0xc0] sm:$0xff]  ;;  %v1802_v13 = vld [vmem:[%s2238_s25 + $0xc8] sm:$0xff] }
  0x1b   : > { %409 = vst.msk [vmem:[#allocation2 + $0x39] sm:$0x1] %vm398_vm2, %v2078_v0  ;;  %410 = vst.msk [vmem:[#allocation2 + $0x49] sm:$0x1] %vm398_vm2, %v2078_v0  ;;  %v374_v8 = vmax.f32 %v1793_v3, %v1801_v7  ;;  %v333_v14 = vld [vmem:[%s2238_s25 + $0x10] sm:$0xff]  ;;  %v375_v16 = vmax.f32 %v1794_v12, %v1802_v13  ;;  %v334_v22 = vld [vmem:[%s2238_s25 + $0x18] sm:$0xff] }
  0x1c   : > { %411 = vst.msk [vmem:[#allocation2 + $0x59] sm:$0x1] %vm398_vm2, %v2078_v0  ;;  %412 = vst.msk [vmem:[#allocation2 + $0x69] sm:$0x1] %vm398_vm2, %v2078_v0  ;;  %v440_v4 = vld [vmem:[#allocation2 + $0x2] sm:$0xff]  ;;  %v1787_v17 = vld [vmem:[%s2238_s25 + $0x50] sm:$0xff] }
  0x1d   : > { %413 = vst.msk [vmem:[#allocation2 + $0x79] sm:$0x1] %vm398_vm2, %v2078_v0  ;;  %414 = vst.msk [vmem:[#allocation2 + $0x89] sm:$0x1] %vm398_vm2, %v2078_v0  ;;  %v432_v5 = vld [vmem:[#allocation2 + $0x1] sm:$0xff]  ;;  %537 = vrot.lane.b32.xlu1 %v440_v4, %s2079_s26  ;;  %v382_v15 = vmax.f32 %v348_v6, %v374_v8  ;;  %v1795_v18 = vld [vmem:[%s2238_s25 + $0x90] sm:$0xff]  ;;  %v350_v20 = vmax.f32 %v333_v14, %v1787_v17  ;;  %v383_v25 = vmax.f32 %v349_v11, %v375_v16 }
  0x1e   : > { %505 = vrot.lane.b32.xlu0 %v432_v5, %s2080_s27  ;;  %v1803_v19 = vld [vmem:[%s2238_s25 + $0xd0] sm:$0xff]  ;;  %v1788_v23 = vld [vmem:[%s2238_s25 + $0x58] sm:$0xff]  ;;  %v335_v28 = vld [vmem:[%s2238_s25 + $0x20] sm:$0xff]  ;;  %vm805_vm9 = vcmask 228352   ;;  %vm814_vm10 = vcmask 261120   ;;  %vm835_vm11 = vcmask 293888  }
  0x1f   : > { %v376_v21 = vmax.f32 %v1795_v18, %v1803_v19  ;;  %v1796_v24 = vld [vmem:[%s2238_s25 + $0x98] sm:$0xff]  ;;  %416 = vst.msk [vmem:[#allocation2 + $0x11] sm:$0xff] %vm415_vm3, %v382_v15  ;;  %v351_v26 = vmax.f32 %v334_v22, %v1788_v23  ;;  %v1789_v29 = vld [vmem:[%s2238_s25 + $0x60] sm:$0xff]  ;;  %v336_v35 = vld [vmem:[%s2238_s25 + $0x28] sm:$0xff]  ;;  %s2758_s22 = smov 56   ;;  %vm2091_vm12 = vmmov 0  }
  0x20   : > { %v1804_v27 = vld [vmem:[%s2238_s25 + $0xd8] sm:$0xff]  ;;  %v352_v32 = vmax.f32 %v335_v28, %v1789_v29  ;;  %v1797_v33 = vld [vmem:[%s2238_s25 + $0xa0] sm:$0xff]  ;;  %417 = vst.msk [vmem:[#allocation2 + $0x21] sm:$0xff] %vm415_vm3, %v383_v25  ;;  %v1790_v37 = vld [vmem:[%s2238_s25 + $0x68] sm:$0xff]  ;;  %1904 = vmatprep.mubr.msk.f32.mxu1 %vm2091_vm12, %v2078_v0  ;;  %vm1507_vm13 = vcmask 326656   ;;  %vm1516_vm14 = vcmask 392192  }
  0x21   : > { %v384_v30 = vmax.f32 %v350_v20, %v376_v21  ;;  %v377_v31 = vmax.f32 %v1796_v24, %v1804_v27  ;;  %v1805_v34 = vld [vmem:[%s2238_s25 + $0xe0] sm:$0xff]  ;;  %v1798_v38 = vld [vmem:[%s2238_s25 + $0xa8] sm:$0xff]  ;;  %v353_v41 = vmax.f32 %v336_v35, %v1790_v37  ;;  %v337_v43 = vld [vmem:[%s2238_s25 + $0x30] sm:$0xff]  ;;  %vm1525_vm15 = vcmask 457728  }
  0x22   : > { %v378_v36 = vmax.f32 %v1797_v33, %v1805_v34  ;;  %v1806_v39 = vld [vmem:[%s2238_s25 + $0xe8] sm:$0xff]  ;;  %v1791_v44 = vld [vmem:[%s2238_s25 + $0x70] sm:$0xff]  ;;  %v338_v49 = vld [vmem:[%s2238_s25 + $0x38] sm:$0xff]  ;;  %vm1534_vm1 = vcmask 523264   ;;  %vm1550_vm2 = vcmask 588800  }
  0x23   : > { %418 = vst.msk [vmem:[#allocation2 + $0x31] sm:$0xff] %vm415_vm3, %v384_v30  ;;  %v385_v40 = vmax.f32 %v351_v26, %v377_v31  ;;  %v379_v42 = vmax.f32 %v1798_v38, %v1806_v39  ;;  %v1799_v45 = vld [vmem:[%s2238_s25 + $0xb0] sm:$0xff]  ;;  %v354_v47 = vmax.f32 %v337_v43, %v1791_v44  ;;  %v1792_v50 = vld [vmem:[%s2238_s25 + $0x78] sm:$0xff]  ;;  %v827_v3 = vld [vmem:[%s2745_s1 + $0x20] sm:$0xf] }
  0x24   : > { %v386_v46 = vmax.f32 %v352_v32, %v378_v36  ;;  %v1807_v48 = vld [vmem:[%s2238_s25 + $0xf0] sm:$0xff]  ;;  %v355_v53 = vmax.f32 %v338_v49, %v1792_v50  ;;  %v1800_v54 = vld [vmem:[%s2238_s25 + $0xb8] sm:$0xff]  ;;  %1866 = vmatprep.subr.msk.mxu0 %vm860_vm4, %v827_v3  ;;  %v824_v8 = vld [vmem:[%s2745_s1 + $0x8] sm:$0xff] }
  0x25   : > { %419 = vst.msk [vmem:[#allocation2 + $0x41] sm:$0xff] %vm415_vm3, %v385_v40  ;;  %v387_v51 = vmax.f32 %v353_v41, %v379_v42  ;;  %v380_v52 = vmax.f32 %v1799_v45, %v1807_v48  ;;  %v1808_v55 = vld [vmem:[%s2238_s25 + $0xf8] sm:$0xff]  ;;  %1867 = vmatpush3.msk.msra.mxu0 %vm860_vm4, %v827_v3  ;;  %v825_v7 = vld [vmem:[%s2745_s1 + $0x10] sm:$0xff]  ;;  %v823_v10 = vld [vmem:[%s2745_s1] sm:$0xff]  ;;  %s2764_s25 = smov 20  }
  0x26   : > { %420 = vst.msk [vmem:[#allocation2 + $0x51] sm:$0xff] %vm415_vm3, %v386_v46  ;;  %v381_v56 = vmax.f32 %v1800_v54, %v1808_v55  ;;  %v441_v57 = vld [vmem:[#allocation2 + $0x12] sm:$0xff]  ;;  %v424_v44 = vld [vmem:[#allocation2] sm:$0xff] }
  0x27   : > { %v433_v58 = vld [vmem:[#allocation2 + $0x11] sm:$0xff]  ;;  %421 = vst.msk [vmem:[#allocation2 + $0x61] sm:$0xff] %vm415_vm3, %v387_v51  ;;  %v388_v59 = vmax.f32 %v354_v47, %v380_v52  ;;  %539 = vrot.lane.b32.xlu1 %v441_v57, %s2079_s26  ;;  %v2282_v61 = vld [vmem:[#allocation2 + $0x20] sm:$0xff] }
  0x28   : > { %507 = vrot.lane.b32.xlu0 %v433_v58, %s2080_s27  ;;  %v389_v60 = vmax.f32 %v355_v53, %v381_v56  ;;  %v2284_v62 = vld [vmem:[#allocation2 + $0x10] sm:$0xff]  ;;  %v434_v63 = vld [vmem:[#allocation2 + $0x21] sm:$0xff]  ;;  %v826_v6 = vld [vmem:[%s2745_s1 + $0x18] sm:$0xff] }
  0x29   : > { %422 = vst.msk [vmem:[#allocation2 + $0x71] sm:$0xff] %vm415_vm3, %v388_v59  ;;  %v442_v1 = vld [vmem:[#allocation2 + $0x22] sm:$0xff]  ;;  %1868 = vmatprep.subr.mxu0 %v826_v6  ;;  %v2380_v27 = vld [vmem:[#allocation2 + $0x90] sm:$0xff] }
  0x2a   : > { %423 = vst.msk [vmem:[#allocation2 + $0x81] sm:$0xff] %vm415_vm3, %v389_v60  ;;  %v435_v2 = vld [vmem:[#allocation2 + $0x31] sm:$0xff]  ;;  %1869 = vmatpush3.msra.mxu0 %v826_v6 }
  0x2b   : > { %571 = vrot.lane.b32.xlu1 %v2282_v61, %s2081_s28  ;;  %v2304_v4 = vld [vmem:[#allocation2 + $0x30] sm:$0xff]  ;;  %1870 = vmatprep.subr.mxu0 %v825_v7 }
  0x2c   : > { %569 = vrot.lane.b32.xlu0 %v2284_v62, %s2081_s28  ;;  %v443_v5 = vld [vmem:[#allocation2 + $0x32] sm:$0xff]  ;;  %v2321_v9 = vld [vmem:[#allocation2 + $0x40] sm:$0xff]  ;;  %1871 = vmatpush3.msra.mxu0 %v825_v7 }
  0x2d   : > { %1872 = vmatprep.subr.mxu0 %v824_v8  ;;  %v459_v11 = vld [vmem:[#allocation2 + $0x41] sm:$0xff]  ;;  %v437_v13 = vld [vmem:[#allocation2 + $0x51] sm:$0xff] }
  0x2e   : > { %1873 = vmatpush3.msra.mxu0 %v824_v8  ;;  %v444_v12 = vld [vmem:[#allocation2 + $0x42] sm:$0xff]  ;;  %v2340_v14 = vld [vmem:[#allocation2 + $0x50] sm:$0xff] }
  0x2f   : > { %509 = vrot.lane.b32.xlu1 %v434_v63, %s2080_s27  ;;  %1874 = vmatprep.subr.mxu0 %v823_v10  ;;  %v445_v15 = vld [vmem:[#allocation2 + $0x52] sm:$0xff]  ;;  %v2348_v16 = vld [vmem:[#allocation2 + $0x60] sm:$0xff] }
  0x30   : > { %601 = vrot.lane.b32.xlu0 %v433_v58, %s2082_s29  ;;  %1875 = vmatpush3.msra.mxu0 %v823_v10  ;;  %v461_v17 = vld [vmem:[#allocation2 + $0x61] sm:$0xff]  ;;  %v439_v19 = vld [vmem:[#allocation2 + $0x71] sm:$0xff] }
  0x31   : > { %v446_v18 = vld [vmem:[#allocation2 + $0x62] sm:$0xff]  ;;  %v2364_v20 = vld [vmem:[#allocation2 + $0x70] sm:$0xff] }
  0x32   : > { %v447_v21 = vld [vmem:[#allocation2 + $0x72] sm:$0xff]  ;;  %v455_v22 = vld [vmem:[#allocation2 + $0x80] sm:$0xff] }
  0x33   : > { %633 = vrot.lane.b32.xlu1 %v441_v57, %s2754_s14  ;;  %v463_v23 = vld [vmem:[#allocation2 + $0x81] sm:$0xff]  ;;  %v2385_v28 = vld [vmem:[#allocation2 + $0x91] sm:$0xff] }
  0x34   : > { %603 = vrot.lane.b32.xlu0 %v434_v63, %s2082_s29  ;;  %v471_v24 = vld [vmem:[#allocation2 + $0x82] sm:$0xff]  ;;  %v2390_v31 = vld [vmem:[#allocation2 + $0x92] sm:$0xff] }
  0x37   : > { %541 = vrot.lane.b32.xlu1 %v442_v1, %s2079_s26 }
  0x38   : > { %511 = vrot.lane.b32.xlu0 %v435_v2, %s2080_s27 }
  0x3b   : > { %665 = vrot.lane.b32.xlu1 %v2282_v61, %s2760_s21 }
  0x3c   : > { %635 = vrot.lane.b32.xlu0 %v442_v1, %s2754_s14  ;;  %s2085_s14 = smov 28  }
  0x3f   : > { %573 = vrot.lane.b32.xlu1 %v2304_v4, %s2081_s28 }
  0x40   : > { %543 = vrot.lane.b32.xlu0 %v443_v5, %s2079_s26 }
  0x43   : > { %697 = vrot.lane.b32.xlu1 %v434_v63, %s2085_s14 }
  0x44   : > { %667 = vrot.lane.b32.xlu0 %v2304_v4, %s2760_s21 }
  0x47   : > { %605 = vrot.lane.b32.xlu1 %v435_v2, %s2082_s29 }
  0x48   : > { %575 = vrot.lane.b32.xlu0 %v2321_v9, %s2081_s28 }
  0x4b   : > { %729 = vrot.lane.b32.xlu1 %v442_v1, %s2086_s24 }
  0x4c   : > { %699 = vrot.lane.b32.xlu0 %v435_v2, %s2085_s14 }
  0x4f   : > { %607 = vrot.lane.b32.xlu1 %v459_v11, %s2082_s29 }
  0x50   : > { %513 = vrot.lane.b32.xlu0 %v459_v11, %s2080_s27 }
  0x53   : > { %731 = vrot.lane.b32.xlu1 %v443_v5, %s2086_s24 }
  0x54   : > { %637 = vrot.lane.b32.xlu0 %v443_v5, %s2764_s25 }
  0x57   : > { %545 = vrot.lane.b32.xlu1 %v444_v12, %s2079_s26 }
  0x58   : > { %515 = vrot.lane.b32.xlu0 %v437_v13, %s2080_s27 }
  0x5b   : > { %669 = vrot.lane.b32.xlu1 %v2321_v9, %s2760_s21 }
  0x5c   : > { %639 = vrot.lane.b32.xlu0 %v444_v12, %s2764_s25 }
  0x5f   : > { %577 = vrot.lane.b32.xlu1 %v2340_v14, %s2081_s28 }
  0x60   : > { %547 = vrot.lane.b32.xlu0 %v445_v15, %s2079_s26 }
  0x63   : > { %701 = vrot.lane.b32.xlu1 %v459_v11, %s2085_s14 }
  0x64   : > { %671 = vrot.lane.b32.xlu0 %v2340_v14, %s2760_s21 }
  0x67   : > { %609 = vrot.lane.b32.xlu1 %v437_v13, %s2082_s29 }
  0x68   : > { %579 = vrot.lane.b32.xlu0 %v2348_v16, %s2081_s28 }
  0x6b   : > { %733 = vrot.lane.b32.xlu1 %v444_v12, %s2086_s24 }
  0x6c   : > { %703 = vrot.lane.b32.xlu0 %v437_v13, %s2085_s14 }
  0x6f   : > { %611 = vrot.lane.b32.xlu1 %v461_v17, %s2082_s29 }
  0x70   : > { %517 = vrot.lane.b32.xlu0 %v461_v17, %s2080_s27 }
  0x73   : > { %735 = vrot.lane.b32.xlu1 %v445_v15, %s2086_s24 }
  0x74   : > { %641 = vrot.lane.b32.xlu0 %v445_v15, %s2764_s25 }
  0x77   : > { %549 = vrot.lane.b32.xlu1 %v446_v18, %s2079_s26 }
  0x78   : > { %519 = vrot.lane.b32.xlu0 %v439_v19, %s2080_s27 }
  0x7b   : > { %673 = vrot.lane.b32.xlu1 %v2348_v16, %s2760_s21 }
  0x7c   : > { %643 = vrot.lane.b32.xlu0 %v446_v18, %s2764_s25 }
  0x7f   : > { %581 = vrot.lane.b32.xlu1 %v2364_v20, %s2081_s28 }
  0x80   : > { %551 = vrot.lane.b32.xlu0 %v447_v21, %s2079_s26 }
  0x83   : > { %705 = vrot.lane.b32.xlu1 %v461_v17, %s2085_s14 }
  0x84   : > { %675 = vrot.lane.b32.xlu0 %v2364_v20, %s2760_s21 }
  0x87   : > { %613 = vrot.lane.b32.xlu1 %v439_v19, %s2082_s29 }
  0x88   : > { %583 = vrot.lane.b32.xlu0 %v455_v22, %s2081_s28 }
  0x8b   : > { %737 = vrot.lane.b32.xlu1 %v446_v18, %s2086_s24 }
  0x8c   : > { %707 = vrot.lane.b32.xlu0 %v439_v19, %s2085_s14 }
  0x8f   : > { %645 = vrot.lane.b32.xlu1 %v447_v21, %s2764_s25  ;;  %v538_v25 = vpop.permute.xlu1 %537 }
  0x90   : > { %615 = vrot.lane.b32.xlu0 %v463_v23, %s2082_s29  ;;  %v506_v26 = vpop.permute.xlu0 %505 }
  0x91   : > { %v753_v45 = vsel %vm415_vm3, %v424_v44, %v506_v26 }
  0x92   : > { %v761_v48 = vsel %vm390_vm0, %v753_v45, %v538_v25 }
  0x93   : > { %647 = vrot.lane.b32.xlu1 %v471_v24, %s2764_s25 }
  0x94   : > { %739 = vrot.lane.b32.xlu0 %v447_v21, %s2086_s24 }
  0x97   : > { %679 = vrot.lane.b32.xlu1 %v2380_v27, %s2760_s21 }
  0x98   : > { %677 = vrot.lane.b32.xlu0 %v455_v22, %s2760_s21  ;;  %s2765_s21 = smov 24  }
  0x99   : > { %v540_v29 = vpop.permute.xlu1 %539 }
  0x9a   : > { %v508_v30 = vpop.permute.xlu0 %507 }
  0x9b   : > { %711 = vrot.lane.b32.xlu1 %v2385_v28, %s2085_s14  ;;  %v754_v55 = vsel %vm415_vm3, %v2284_v62, %v508_v30 }
  0x9c   : > { %709 = vrot.lane.b32.xlu0 %v463_v23, %s2085_s14  ;;  %v762_v60 = vsel %vm390_vm0, %v754_v55, %v540_v29 }
  0x9d   : > { %v572_v32 = vpop.permute.xlu1 %571 }
  0x9e   : > { %v570_v33 = vpop.permute.xlu0 %569  ;;  %v771_v63 = vsel %vm769_vm5, %v762_v60, %v572_v32 }
  0x9f   : > { %743 = vrot.lane.b32.xlu1 %v2390_v31, %s2086_s24  ;;  %v770_v49 = vsel %vm769_vm5, %v761_v48, %v570_v33 }
  0xa0   : > { %741 = vrot.lane.b32.xlu0 %v471_v24, %s2086_s24 }
  0xa1   : > { %v510_v34 = vpop.permute.xlu1 %509 }
  0xa2   : > { %v602_v35 = vpop.permute.xlu0 %601  ;;  %v755_v22 = vsel %vm415_vm3, %v2282_v61, %v510_v34 }
  0xa3   : > { %v779_v52 = vsel %vm778_vm6, %v770_v49, %v602_v35 }
  0xa5   : > { %v634_v36 = vpop.permute.xlu1 %633 }
  0xa6   : > { %v604_v37 = vpop.permute.xlu0 %603  ;;  %v788_v53 = vsel %vm787_vm7, %v779_v52, %v634_v36 }
  0xa7   : > { %v780_v3 = vsel %vm778_vm6, %v771_v63, %v604_v37 }
  0xa9   : > { %v542_v38 = vpop.permute.xlu1 %541 }
  0xaa   : > { %v512_v39 = vpop.permute.xlu0 %511  ;;  %v763_v23 = vsel %vm390_vm0, %v755_v22, %v542_v38 }
  0xab   : > { %v756_v61 = vsel %vm415_vm3, %v2304_v4, %v512_v39 }
  0xad   : > { %v666_v40 = vpop.permute.xlu1 %665 }
  0xae   : > { %v636_v41 = vpop.permute.xlu0 %635  ;;  %v797_v54 = vsel %vm796_vm8, %v788_v53, %v666_v40 }
  0xaf   : > { %v789_v5 = vsel %vm787_vm7, %v780_v3, %v636_v41 }
  0xb1   : > { %v574_v42 = vpop.permute.xlu1 %573 }
  0xb2   : > { %v544_v43 = vpop.permute.xlu0 %543  ;;  %v772_v24 = vsel %vm769_vm5, %v763_v23, %v574_v42 }
  0xb3   : > { %v764_v34 = vsel %vm390_vm0, %v756_v61, %v544_v43 }
  0xb5   : > { %v698_v46 = vpop.permute.xlu1 %697 }
  0xb6   : > { %v668_v47 = vpop.permute.xlu0 %667  ;;  %v806_v56 = vsel %vm805_vm9, %v797_v54, %v698_v46 }
  0xb7   : > { %v798_v62 = vsel %vm796_vm8, %v789_v5, %v668_v47 }
  0xb9   : > { %v606_v50 = vpop.permute.xlu1 %605 }
  0xba   : > { %v576_v51 = vpop.permute.xlu0 %575  ;;  %v781_v29 = vsel %vm778_vm6, %v772_v24, %v606_v50 }
  0xbb   : > { %v773_v38 = vsel %vm769_vm5, %v764_v34, %v576_v51 }
  0xbd   : > { %v730_v57 = vpop.permute.xlu1 %729 }
  0xbe   : > { %v700_v58 = vpop.permute.xlu0 %699  ;;  %v815_v59 = vsel %vm814_vm10, %v806_v56, %v730_v57 }
  0xbf   : > { %1876 = vmatprep.mubr.msk.f32.mxu0 %vm835_vm11, %v815_v59  ;;  %v807_v6 = vsel %vm805_vm9, %v798_v62, %v700_v58 }
  0xc1   : > { %v608_v1 = vpop.permute.xlu1 %607 }
  0xc2   : > { %v514_v2 = vpop.permute.xlu0 %513  ;;  %v782_v42 = vsel %vm778_vm6, %v773_v38, %v608_v1 }
  0xc3   : > { %v757_v55 = vsel %vm415_vm3, %v2321_v9, %v514_v2 }
  0xc5   : > { %v732_v7 = vpop.permute.xlu1 %731 }
  0xc6   : > { %v638_v8 = vpop.permute.xlu0 %637  ;;  %v816_v10 = vsel %vm814_vm10, %v807_v6, %v732_v7 }
  0xc7   : > { %1877 = vmatmul.mubr.msk.f32.vlgmr.msra.gmra.mxu0 %vm835_vm11, %v816_v10  ;;  %v790_v30 = vsel %vm787_vm7, %v781_v29, %v638_v8 }
  0xc9   : > { %v546_v11 = vpop.permute.xlu1 %545 }
  0xca   : > { %v516_v12 = vpop.permute.xlu0 %515  ;;  %v765_v56 = vsel %vm390_vm0, %v757_v55, %v546_v11 }
  0xcb   : > { %v758_v9 = vsel %vm415_vm3, %v2340_v14, %v516_v12 }
  0xcd   : > { %v670_v13 = vpop.permute.xlu1 %669 }
  0xce   : > { %v640_v15 = vpop.permute.xlu0 %639  ;;  %v799_v32 = vsel %vm796_vm8, %v790_v30, %v670_v13 }
  0xcf   : > { %v791_v44 = vsel %vm787_vm7, %v782_v42, %v640_v15 }
  0xd1   : > { %v578_v17 = vpop.permute.xlu1 %577 }
  0xd2   : > { %v548_v18 = vpop.permute.xlu0 %547  ;;  %v774_v57 = vsel %vm769_vm5, %v765_v56, %v578_v17 }
  0xd3   : > { %v766_v2 = vsel %vm390_vm0, %v758_v9, %v548_v18 }
  0xd5   : > { %v702_v19 = vpop.permute.xlu1 %701 }
  0xd6   : > { %v672_v21 = vpop.permute.xlu0 %671  ;;  %v808_v33 = vsel %vm805_vm9, %v799_v32, %v702_v19 }
  0xd7   : > { %v800_v45 = vsel %vm796_vm8, %v791_v44, %v672_v21 }
  0xd9   : > { %v610_v25 = vpop.permute.xlu1 %609 }
  0xda   : > { %v580_v26 = vpop.permute.xlu0 %579  ;;  %v783_v60 = vsel %vm778_vm6, %v774_v57, %v610_v25 }
  0xdb   : > { %v775_v7 = vsel %vm769_vm5, %v766_v2, %v580_v26 }
  0xdd   : > { %v734_v35 = vpop.permute.xlu1 %733 }
  0xde   : > { %v704_v36 = vpop.permute.xlu0 %703  ;;  %v817_v37 = vsel %vm814_vm10, %v808_v33, %v734_v35 }
  0xdf   : > { %1879 = vmatprep.mubr.msk.f32.mxu0 %vm835_vm11, %v817_v37  ;;  %v809_v46 = vsel %vm805_vm9, %v800_v45, %v704_v36 }
  0xe1   : > { %v612_v40 = vpop.permute.xlu1 %611 }
  0xe2   : > { %v518_v41 = vpop.permute.xlu0 %517  ;;  %v784_v11 = vsel %vm778_vm6, %v775_v7, %v612_v40 }
  0xe3   : > { %v759_v22 = vsel %vm415_vm3, %v2348_v16, %v518_v41 }
  0xe5   : > { %v736_v47 = vpop.permute.xlu1 %735 }
  0xe6   : > { %v642_v48 = vpop.permute.xlu0 %641  ;;  %v818_v4 = vsel %vm814_vm10, %v809_v46, %v736_v47  ;;  %v1809_v47 = vld [vmem:[%s2746_s2] ss:$0 sm:$0xff] }
  0xe7   : > { %1880 = vmatmul.mubr.msk.f32.gmra.mxu0 %vm835_vm11, %v818_v4  ;;  %v792_v63 = vsel %vm787_vm7, %v783_v60, %v642_v48 }
  0xe9   : > { %v550_v39 = vpop.permute.xlu1 %549 }
  0xea   : > { %v520_v43 = vpop.permute.xlu0 %519  ;;  %v767_v24 = vsel %vm390_vm0, %v759_v22, %v550_v39 }
  0xeb   : > { %v760_v23 = vsel %vm415_vm3, %v2364_v20, %v520_v43 }
  0xed   : > { %v674_v49 = vpop.permute.xlu1 %673 }
  0xee   : > { %v644_v50 = vpop.permute.xlu0 %643  ;;  %v801_v1 = vsel %vm796_vm8, %v792_v63, %v674_v49 }
  0xef   : > { %v793_v13 = vsel %vm787_vm7, %v784_v11, %v644_v50 }
  0xf1   : > { %v582_v51 = vpop.permute.xlu1 %581 }
  0xf2   : > { %v552_v52 = vpop.permute.xlu0 %551  ;;  %v776_v26 = vsel %vm769_vm5, %v767_v24, %v582_v51 }
  0xf3   : > { %v768_v25 = vsel %vm390_vm0, %v760_v23, %v552_v52 }
  0xf5   : > { %v706_v53 = vpop.permute.xlu1 %705 }
  0xf6   : > { %v676_v54 = vpop.permute.xlu0 %675  ;;  %v810_v3 = vsel %vm805_vm9, %v801_v1, %v706_v53 }
  0xf7   : > { %v802_v15 = vsel %vm796_vm8, %v793_v13, %v676_v54 }
  0xf9   : > { %v614_v58 = vpop.permute.xlu1 %613 }
  0xfa   : > { %v584_v59 = vpop.permute.xlu0 %583  ;;  %v785_v33 = vsel %vm778_vm6, %v776_v26, %v614_v58 }
  0xfb   : > { %v777_v29 = vsel %vm769_vm5, %v768_v25, %v584_v59 }
  0xfd   : > { %v738_v5 = vpop.permute.xlu1 %737 }
  0xfe   : > { %v708_v62 = vpop.permute.xlu0 %707  ;;  %v819_v6 = vsel %vm814_vm10, %v810_v3, %v738_v5 }
  0xff   : > { %1882 = vmatprep.mubr.msk.f32.mxu0 %vm835_vm11, %v819_v6  ;;  %v811_v17 = vsel %vm805_vm9, %v802_v15, %v708_v62 }
 0x101   : > { %v646_v8 = vpop.permute.xlu1 %645 }
 0x102   : > { %v616_v10 = vpop.permute.xlu0 %615  ;;  %v794_v36 = vsel %vm787_vm7, %v785_v33, %v646_v8 }
 0x103   : > { %v786_v35 = vsel %vm778_vm6, %v777_v29, %v616_v10 }
 0x105   : > { %v648_v19 = vpop.permute.xlu1 %647 }
 0x106   : > { %v740_v21 = vpop.permute.xlu0 %739  ;;  %v795_v16 = vsel %vm787_vm7, %v786_v35, %v648_v19 }
 0x107   : > { %v820_v14 = vsel %vm814_vm10, %v811_v17, %v740_v21 }
 0x108   : > { %1883 = vmatmul.mubr.msk.f32.gmra.mxu0 %vm835_vm11, %v820_v14 }
 0x109   : > { %v680_v12 = vpop.permute.xlu1 %679 }
 0x10a   : > { %v678_v18 = vpop.permute.xlu0 %677  ;;  %v804_v20 = vsel %vm796_vm8, %v795_v16, %v680_v12 }
 0x10b   : > { %v803_v37 = vsel %vm796_vm8, %v794_v36, %v678_v18 }
 0x10d   : > { %v712_v30 = vpop.permute.xlu1 %711 }
 0x10e   : > { %v710_v32 = vpop.permute.xlu0 %709  ;;  %v813_v61 = vsel %vm805_vm9, %v804_v20, %v712_v30 }
 0x10f   : > { %v812_v34 = vsel %vm805_vm9, %v803_v37, %v710_v32 }
 0x111   : > { %v744_v38 = vpop.permute.xlu1 %743 }
 0x112   : > { %v742_v40 = vpop.permute.xlu0 %741  ;;  %v822_v41 = vsel %vm814_vm10, %v813_v61, %v744_v38 }
 0x113   : > { %v821_v42 = vsel %vm814_vm10, %v812_v34, %v742_v40 }
 0x114   : > { %1885 = vmatprep.mubr.msk.f32.mxu0 %vm835_vm11, %v821_v42 }
 0x115   : > { %1886 = vmatmul.mubr.msk.f32.gmra.mxu0 %vm835_vm11, %v822_v41 }
 0x187   : > { %v1878_v44 = vpop.f32.mrf.mxu0 }
 0x188   : > { %v936_v4 = vadd.f32 %v1878_v44, %v1809_v47 }
 0x189   : > { %v930_v45 = vpop.f32.mrf.mxu0 }
 0x18a   : > { %v931_v39 = vadd.f32 %v1809_v47, %v930_v45  ;;  %v1820_v49 = vmul.f32 -1.442695, %v936_v4 }
 0x18c   : > { %v1819_v50 = vmul.f32 -1.442695, %v931_v39  ;;  %1975 = vpow2.f32 %v1820_v49 }
 0x18e   : > { %1977 = vpow2.f32 %v1819_v50 }
 0x199   : > { %v1976_v60 = vpop.eup %1975 }
 0x19a   : > { %v994_v3 = vadd.f32 1.0, %v1976_v60 }
 0x19b   : > { %v1978_v63 = vpop.eup %1977 }
 0x19c   : > { %v993_v5 = vadd.f32 1.0, %v1978_v63 }
 0x1a7   : > { %v1881_v46 = vpop.f32.mrf.mxu0 }
 0x1a8   : > { %v946_v52 = vadd.f32 %v1881_v46, %v1809_v47 }
 0x1a9   : > { %v940_v48 = vpop.f32.mrf.mxu0 }
 0x1aa   : > { %v941_v43 = vadd.f32 %v1809_v47, %v940_v48  ;;  %v1822_v53 = vmul.f32 -1.442695, %v946_v52 }
 0x1ac   : > { %v1821_v51 = vmul.f32 -1.442695, %v941_v43 }
 0x1ae   : > { %1979 = vpow2.f32 %v1821_v51 }
 0x1af   : > { %1981 = vpow2.f32 %v1822_v53 }
 0x1bb   : > { %v1980_v1 = vpop.eup %1979 }
 0x1bc   : > { %v995_v62 = vadd.f32 1.0, %v1980_v1  ;;  %v1982_v7 = vpop.eup %1981 }
 0x1bd   : > { %v996_v13 = vadd.f32 1.0, %v1982_v7 }
 0x1c8   : > { %v1884_v54 = vpop.f32.mrf.mxu0 }
 0x1c9   : > { %v956_v55 = vadd.f32 %v1884_v54, %v1809_v47 }
 0x1ca   : > { %v950_v56 = vpop.f32.mrf.mxu0 }
 0x1cb   : > { %v951_v57 = vadd.f32 %v1809_v47, %v950_v56  ;;  %v1824_v59 = vmul.f32 -1.442695, %v956_v55 }
 0x1cd   : > { %v1823_v58 = vmul.f32 -1.442695, %v951_v57 }
 0x1cf   : > { %1983 = vpow2.f32 %v1823_v58 }
 0x1d0   : > { %1985 = vpow2.f32 %v1824_v59 }
 0x1d1   : > { %1987 = vrcp.f32 %v994_v3 }
 0x1d2   : > { %1989 = vrcp.f32 %v993_v5 }
 0x1d3   : > { %1991 = vrcp.f32 %v995_v62 }
 0x1d5   : > { %v1887_v6 = vpop.f32.mrf.mxu0 }
 0x1d6   : > { %v966_v9 = vadd.f32 %v1887_v6, %v1809_v47 }
 0x1d7   : > { %v960_v2 = vpop.f32.mrf.mxu0 }
 0x1d8   : > { %v1826_v8 = vmul.f32 -1.442695, %v966_v9  ;;  %v961_v10 = vadd.f32 %v1809_v47, %v960_v2 }
 0x1da   : > { %1993 = vpow2.f32 %v1826_v8  ;;  %v1825_v11 = vmul.f32 -1.442695, %v961_v10 }
 0x1dc   : > { %v1984_v15 = vpop.eup %1983  ;;  %1995 = vpow2.f32 %v1825_v11 }
 0x1dd   : > { %v997_v17 = vadd.f32 1.0, %v1984_v15  ;;  %v1986_v19 = vpop.eup %1985  ;;  %1997 = vrcp.f32 %v996_v13 }
 0x1de   : > { %v998_v21 = vadd.f32 1.0, %v1986_v19  ;;  %v1988_v14 = vpop.eup %1987 }
 0x1df   : > { %1999 = vrcp.f32 %v997_v17  ;;  %v1990_v12 = vpop.eup %1989  ;;  %v1018_v26 = vmul.f32 %v1988_v14, %v936_v4 }
 0x1e0   : > { %v1992_v18 = vpop.eup %1991  ;;  %2001 = vrcp.f32 %v998_v21  ;;  %v1017_v23 = vmul.f32 %v1990_v12, %v931_v39 }
 0x1e1   : > { %v1019_v29 = vmul.f32 %v1992_v18, %v941_v43  ;;  %v1028_v36 = vsel %vm390_vm0, %v1018_v26, 0.0 }
 0x1e2   : > { %v1027_v33 = vsel %vm390_vm0, %v1017_v23, 0.0 }
 0x1e3   : > { %v1030_v16 = vsel %vm390_vm0, %v1019_v29, 0.0  ;;  %v1029_v20 = vadd.f32 %v1028_v36, %v1027_v33 }
 0x1e5   : > { %v1031_v34 = vadd.f32 %v1030_v16, %v1029_v20 }
 0x1e7   : > { %v1994_v22 = vpop.eup %1993 }
 0x1e8   : > { %v1000_v24 = vadd.f32 1.0, %v1994_v22 }
 0x1e9   : > { %v1996_v25 = vpop.eup %1995 }
 0x1ea   : > { %2003 = vrcp.f32 %v1000_v24  ;;  %v999_v30 = vadd.f32 1.0, %v1996_v25  ;;  %v1998_v32 = vpop.eup %1997 }
 0x1eb   : > { %v1020_v37 = vmul.f32 %v1998_v32, %v946_v52 }
 0x1ec   : > { %2005 = vrcp.f32 %v999_v30  ;;  %v2000_v35 = vpop.eup %1999 }
 0x1ed   : > { %v1021_v61 = vmul.f32 %v2000_v35, %v951_v57  ;;  %v2002_v38 = vpop.eup %2001  ;;  %v1032_v40 = vsel %vm390_vm0, %v1020_v37, 0.0 }
 0x1ee   : > { %v1033_v42 = vadd.f32 %v1032_v40, %v1031_v34  ;;  %v1022_v44 = vmul.f32 %v2002_v38, %v956_v55  ;;  %v1155_v40 = vld [vmem:[#allocation2 + $0x1] sm:$0xff] }
 0x1ef   : > { %v1034_v41 = vsel %vm390_vm0, %v1021_v61, 0.0 }
 0x1f0   : > { %v1035_v46 = vadd.f32 %v1034_v41, %v1033_v42  ;;  %v1036_v48 = vsel %vm390_vm0, %v1022_v44, 0.0  ;;  %v1163_v42 = vld [vmem:[#allocation2 + $0x2] sm:$0xff] }
 0x1f2   : > { %v1037_v43 = vadd.f32 %v1036_v48, %v1035_v46 }
 0x1f7   : > { %v2004_v45 = vpop.eup %2003 }
 0x1f8   : > { %v1024_v4 = vmul.f32 %v2004_v45, %v966_v9  ;;  %v1827_v45 = vld [vmem:[%s2747_s3] ss:$0 sm:$0xff] }
 0x1f9   : > { %v2006_v47 = vpop.eup %2005 }
 0x1fa   : > { %v1023_v39 = vmul.f32 %v2006_v47, %v961_v10  ;;  %v1040_v51 = vsel %vm390_vm0, %v1024_v4, 0.0 }
 0x1fc   : > { %v1038_v49 = vsel %vm390_vm0, %v1023_v39, 0.0 }
 0x1fd   : > { %v1039_v50 = vadd.f32 %v1038_v49, %v1037_v43 }
 0x1ff   : > { %v1041_v52 = vadd.f32 %v1040_v51, %v1039_v50 }
 0x201   : > { %1042 = vadd.xlane.f32.xlu0 %v1041_v52 }
 0x217   : > { %1227 = vrot.lane.b32.xlu0 %v1155_v40, %s2079_s26 }
 0x21b   : > { %1259 = vrot.lane.b32.xlu0 %v1163_v42, %s2082_s29  ;;  %v1544_v42 = vld [vmem:[%s2750_s6] sm:$0xff] }
 0x28a   : > { %v1043_v53 = vpop.xlane.xlu0 %1042 }
 0x28b   : > { %v1044_v54 = vrot.slane %v1043_v53, 4 }
 0x28d   : > { %v1045_v56 = vadd.f32 %v1044_v54, %v1043_v53 }
 0x28f   : > { %v1046_v57 = vrot.slane %v1045_v56, 2 }
 0x291   : > { %v1047_v55 = vadd.f32 %v1046_v57, %v1045_v56 }
 0x293   : > { %v1048_v58 = vrot.slane %v1047_v55, 1 }
 0x295   : > { %v1049_v59 = vadd.f32 %v1048_v58, %v1047_v55 }
 0x297   : > { %1907 = vpush %v1049_v59 }
 0x2c8   : > { %s1908_s14 = spop %1907 }
 0x2c9   : > { %s1053_s16 = smul.f32 0.001953125, %s1908_s14 }
 0x2cb   : > { %v1054_v60 = vstv %s1053_s16 }
 0x2cc   : > { %v1055_v63 = vsub.f32 %v1017_v23, %v1054_v60  ;;  %v1056_v1 = vsub.f32 %v1018_v26, %v1054_v60  ;;  %v1057_v3 = vsub.f32 %v1019_v29, %v1054_v60  ;;  %v1058_v5 = vsub.f32 %v1020_v37, %v1054_v60 }
 0x2cd   : > { %v1059_v62 = vsub.f32 %v1021_v61, %v1054_v60  ;;  %v1060_v7 = vsub.f32 %v1022_v44, %v1054_v60  ;;  %v1061_v15 = vsub.f32 %v1023_v39, %v1054_v60  ;;  %v1062_v14 = vsub.f32 %v1024_v4, %v1054_v60 }
 0x2ce   : > { %v1063_v6 = vmul.f32 %v1055_v63, %v1055_v63  ;;  %v1064_v9 = vmul.f32 %v1056_v1, %v1056_v1  ;;  %v1065_v2 = vmul.f32 %v1057_v3, %v1057_v3  ;;  %v1066_v8 = vmul.f32 %v1058_v5, %v1058_v5 }
 0x2cf   : > { %v1067_v17 = vmul.f32 %v1059_v62, %v1059_v62  ;;  %v1068_v12 = vmul.f32 %v1060_v7, %v1060_v7  ;;  %v1069_v23 = vmul.f32 %v1061_v15, %v1061_v15  ;;  %v1070_v26 = vmul.f32 %v1062_v14, %v1062_v14 }
 0x2d0   : > { %v1071_v10 = vsel %vm390_vm0, %v1063_v6, 0.0  ;;  %v1072_v11 = vsel %vm390_vm0, %v1064_v9, 0.0  ;;  %v1074_v19 = vsel %vm390_vm0, %v1065_v2, 0.0  ;;  %v1076_v18 = vsel %vm390_vm0, %v1066_v8, 0.0 }
 0x2d1   : > { %v1073_v13 = vadd.f32 %v1072_v11, %v1071_v10  ;;  %v1078_v24 = vsel %vm390_vm0, %v1067_v17, 0.0  ;;  %v1080_v29 = vsel %vm390_vm0, %v1068_v12, 0.0  ;;  %v1082_v32 = vsel %vm390_vm0, %v1069_v23, 0.0 }
 0x2d2   : > { %v1084_v35 = vsel %vm390_vm0, %v1070_v26, 0.0 }
 0x2d3   : > { %v1075_v21 = vadd.f32 %v1074_v19, %v1073_v13 }
 0x2d5   : > { %v1077_v22 = vadd.f32 %v1076_v18, %v1075_v21 }
 0x2d7   : > { %v1079_v25 = vadd.f32 %v1078_v24, %v1077_v22 }
 0x2d9   : > { %v1081_v30 = vadd.f32 %v1080_v29, %v1079_v25 }
 0x2db   : > { %v1083_v33 = vadd.f32 %v1082_v32, %v1081_v30 }
 0x2dd   : > { %v1085_v36 = vadd.f32 %v1084_v35, %v1083_v33 }
 0x2df   : > { %1086 = vadd.xlane.f32.xlu1 %v1085_v36 }
 0x2f0   : > { %1401 = vrot.lane.b32.xlu1 %v2380_v27, %s2756_s17  ;;  %s2090_s17 = smov 40  }
 0x2f4   : > { %1433 = vrot.lane.b32.xlu1 %v2385_v28, %s2758_s22  ;;  %s2766_s22 = smov 48  }
 0x2f8   : > { %1465 = vrot.lane.b32.xlu1 %v2390_v31, %s2089_s23  ;;  %v1828_v31 = vld [vmem:[%s2748_s4] ss:$0 sm:$0xff] }
 0x368   : > { %v1087_v16 = vpop.xlane.xlu1 %1086 }
 0x369   : > { %v1088_v20 = vrot.slane %v1087_v16, 4 }
 0x36b   : > { %v1089_v37 = vadd.f32 %v1088_v20, %v1087_v16  ;;  %v2592_v20 = vpop.permute.xlu0 %1227 }
 0x36c   : > { %v1402_v35 = vpop.permute.xlu1 %1401 }
 0x36d   : > { %v1090_v61 = vrot.slane %v1089_v37, 2 }
 0x36f   : > { %v1091_v34 = vadd.f32 %v1090_v61, %v1089_v37  ;;  %v2092_v61 = vmov 0  }
 0x370   : > { %v1434_v36 = vpop.permute.xlu1 %1433  ;;  %1973 = vset.pattern.permute.xlu0 %v2092_v61  ;;  %1974 = vset.pattern.permute.xlu1 %v2092_v61 }
 0x371   : > { %v1092_v38 = vrot.slane %v1091_v34, 1 }
 0x373   : > { %v1093_v41 = vadd.f32 %v1092_v38, %v1091_v34  ;;  %v2601_v34 = vpop.permute.xlu0 %1259 }
 0x374   : > { %v1466_v37 = vpop.permute.xlu1 %1465 }
 0x375   : > { %1909 = vpush %v1093_v41 }
 0x3a6   : > { %s1910_s25 = spop %1909 }
 0x3a7   : > { %s1097_s27 = smul.f32 0.001953125, %s1910_s25  ;;  %s2767_s25 = smov 56  }
 0x3a9   : > { %s1098_s28 = sadd.f32 1e-05, %s1097_s27 }
 0x3ab   : > { %v1099_v27 = vstv %s1098_s28 }
 0x3ac   : > { %2007 = vrsqrt.f32 %v1099_v27 }
 0x3b9   : > { %v2008_v44 = vpop.eup %2007 }
 0x3ba   : > { %1911 = vpush %v2008_v44 }
 0x3eb   : > { %s1912_s14 = spop %1911 }
 0x3ec   : > { %v1102_v46 = vstv %s1912_s14 }
 0x3ed   : > { %v1103_v28 = vmul.f32 %v1102_v46, %v1055_v63  ;;  %v1104_v47 = vmul.f32 %v1102_v46, %v1056_v1  ;;  %v1105_v48 = vmul.f32 %v1102_v46, %v1057_v3  ;;  %v1106_v4 = vmul.f32 %v1102_v46, %v1058_v5 }
 0x3ee   : > { %v1107_v39 = vmul.f32 %v1102_v46, %v1059_v62  ;;  %v1108_v43 = vmul.f32 %v1102_v46, %v1060_v7  ;;  %v1109_v49 = vmul.f32 %v1102_v46, %v1061_v15  ;;  %v1110_v50 = vmul.f32 %v1102_v46, %v1062_v14 }
 0x3ef   : > { %v1117_v51 = vmul.f32 %v1827_v45, %v1103_v28  ;;  %v1118_v52 = vmul.f32 %v1827_v45, %v1104_v47  ;;  %v1119_v53 = vmul.f32 %v1827_v45, %v1105_v48  ;;  %v1120_v54 = vmul.f32 %v1827_v45, %v1106_v4 }
 0x3f0   : > { %v1121_v56 = vmul.f32 %v1827_v45, %v1107_v39  ;;  %v1122_v57 = vmul.f32 %v1827_v45, %v1108_v43  ;;  %v1123_v55 = vmul.f32 %v1827_v45, %v1109_v49  ;;  %v1124_v58 = vmul.f32 %v1827_v45, %v1110_v50 }
 0x3f1   : > { %v1131_v59 = vadd.f32 %v1828_v31, %v1117_v51  ;;  %v1132_v60 = vadd.f32 %v1828_v31, %v1118_v52  ;;  %v1133_v63 = vadd.f32 %v1828_v31, %v1119_v53  ;;  %v1134_v1 = vadd.f32 %v1828_v31, %v1120_v54 }
 0x3f2   : > { %v1135_v3 = vadd.f32 %v1828_v31, %v1121_v56  ;;  %v1136_v5 = vadd.f32 %v1828_v31, %v1122_v57  ;;  %v1137_v6 = vadd.f32 %v1828_v31, %v1123_v55  ;;  %v1138_v9 = vadd.f32 %v1828_v31, %v1124_v58 }
 0x3f3   : > { %1139 = vst.msk [vmem:[#allocation2 + $0x11] sm:$0xff] %vm390_vm0, %v1131_v59  ;;  %1140 = vst.msk [vmem:[#allocation2 + $0x21] sm:$0xff] %vm390_vm0, %v1132_v60 }
 0x3f4   : > { %1141 = vst.msk [vmem:[#allocation2 + $0x31] sm:$0xff] %vm390_vm0, %v1133_v63  ;;  %1142 = vst.msk [vmem:[#allocation2 + $0x41] sm:$0xff] %vm390_vm0, %v1134_v1 }
 0x3f5   : > { %1143 = vst.msk [vmem:[#allocation2 + $0x51] sm:$0xff] %vm390_vm0, %v1135_v3  ;;  %1144 = vst.msk [vmem:[#allocation2 + $0x61] sm:$0xff] %vm390_vm0, %v1136_v5 }
 0x3f6   : > { %1145 = vst.msk [vmem:[#allocation2 + $0x71] sm:$0xff] %vm390_vm0, %v1137_v6  ;;  %1146 = vst.msk [vmem:[#allocation2 + $0x81] sm:$0xff] %vm390_vm0, %v1138_v9 }
 0x3fa   : > { %v1157_v25 = vld [vmem:[#allocation2 + $0x21] sm:$0xff]  ;;  %v1156_v30 = vld [vmem:[#allocation2 + $0x11] sm:$0xff] }
 0x3fb   : > { %v1159_v14 = vld [vmem:[#allocation2 + $0x41] sm:$0xff]  ;;  %v1158_v22 = vld [vmem:[#allocation2 + $0x31] sm:$0xff] }
 0x3fc   : > { %v1161_v11 = vld [vmem:[#allocation2 + $0x61] sm:$0xff]  ;;  %v1160_v17 = vld [vmem:[#allocation2 + $0x51] sm:$0xff] }
 0x3fd   : > { %v1170_v62 = vld [vmem:[#allocation2 + $0x72] sm:$0xff]  ;;  %v1186_v7 = vld [vmem:[#allocation2 + $0x81] sm:$0xff] }
 0x3fe   : > { %v1162_v2 = vld [vmem:[#allocation2 + $0x71] sm:$0xff]  ;;  %1273 = vrot.lane.b32.xlu1 %v1170_v62, %s2082_s29  ;;  %v1178_v8 = vld [vmem:[#allocation2 + $0x80] sm:$0xff] }
 0x3ff   : > { %1241 = vrot.lane.b32.xlu0 %v1162_v2, %s2079_s26  ;;  %v1194_v10 = vld [vmem:[#allocation2 + $0x82] sm:$0xff]  ;;  %v2523_v15 = vld [vmem:[#allocation2 + $0x70] sm:$0xff] }
 0x400   : > { %v1169_v13 = vld [vmem:[#allocation2 + $0x62] sm:$0xff]  ;;  %v1168_v19 = vld [vmem:[#allocation2 + $0x52] sm:$0xff] }
 0x401   : > { %v2534_v21 = vld [vmem:[#allocation2 + $0x60] sm:$0xff]  ;;  %v2546_v18 = vld [vmem:[#allocation2 + $0x50] sm:$0xff] }
 0x402   : > { %1337 = vrot.lane.b32.xlu1 %v1186_v7, %s2086_s24  ;;  %v1167_v12 = vld [vmem:[#allocation2 + $0x42] sm:$0xff]  ;;  %v1166_v23 = vld [vmem:[#allocation2 + $0x32] sm:$0xff] }
 0x403   : > { %1305 = vrot.lane.b32.xlu0 %v1178_v8, %s2765_s21  ;;  %v2558_v24 = vld [vmem:[#allocation2 + $0x40] sm:$0xff]  ;;  %v2570_v29 = vld [vmem:[#allocation2 + $0x30] sm:$0xff] }
 0x404   : > { %v1165_v26 = vld [vmem:[#allocation2 + $0x22] sm:$0xff]  ;;  %v1164_v32 = vld [vmem:[#allocation2 + $0x12] sm:$0xff] }
 0x405   : > { %v2582_v33 = vld [vmem:[#allocation2 + $0x20] sm:$0xff]  ;;  %v2590_v16 = vld [vmem:[#allocation2 + $0x10] sm:$0xff] }
 0x406   : > { %1369 = vrot.lane.b32.xlu1 %v1194_v10, %s2090_s17 }
 0x407   : > { %1239 = vrot.lane.b32.xlu0 %v1161_v11, %s2079_s26 }
 0x40a   : > { %1367 = vrot.lane.b32.xlu1 %v1170_v62, %s2090_s17 }
 0x40b   : > { %1271 = vrot.lane.b32.xlu0 %v1169_v13, %s2082_s29 }
 0x40e   : > { %1399 = vrot.lane.b32.xlu1 %v1178_v8, %s2766_s22 }
 0x40f   : > { %1303 = vrot.lane.b32.xlu0 %v2523_v15, %s2765_s21 }
 0x412   : > { %1431 = vrot.lane.b32.xlu1 %v1186_v7, %s2767_s25 }
 0x413   : > { %1335 = vrot.lane.b32.xlu0 %v1162_v2, %s2086_s24 }
 0x416   : > { %1463 = vrot.lane.b32.xlu1 %v1194_v10, %s2089_s23 }
 0x417   : > { %1237 = vrot.lane.b32.xlu0 %v1160_v17, %s2079_s26 }
 0x41a   : > { %1365 = vrot.lane.b32.xlu1 %v1169_v13, %s2090_s17 }
 0x41b   : > { %1269 = vrot.lane.b32.xlu0 %v1168_v19, %s2082_s29 }
 0x41e   : > { %1397 = vrot.lane.b32.xlu1 %v2523_v15, %s2766_s22 }
 0x41f   : > { %1301 = vrot.lane.b32.xlu0 %v2534_v21, %s2765_s21 }
 0x422   : > { %1429 = vrot.lane.b32.xlu1 %v1162_v2, %s2767_s25 }
 0x423   : > { %1333 = vrot.lane.b32.xlu0 %v1161_v11, %s2086_s24 }
 0x426   : > { %1461 = vrot.lane.b32.xlu1 %v1170_v62, %s2089_s23 }
 0x427   : > { %1235 = vrot.lane.b32.xlu0 %v1159_v14, %s2079_s26 }
 0x42a   : > { %1363 = vrot.lane.b32.xlu1 %v1168_v19, %s2090_s17 }
 0x42b   : > { %1267 = vrot.lane.b32.xlu0 %v1167_v12, %s2082_s29 }
 0x42e   : > { %1395 = vrot.lane.b32.xlu1 %v2534_v21, %s2766_s22 }
 0x42f   : > { %1299 = vrot.lane.b32.xlu0 %v2546_v18, %s2765_s21 }
 0x432   : > { %1427 = vrot.lane.b32.xlu1 %v1161_v11, %s2767_s25 }
 0x433   : > { %1331 = vrot.lane.b32.xlu0 %v1160_v17, %s2086_s24 }
 0x436   : > { %1459 = vrot.lane.b32.xlu1 %v1169_v13, %s2089_s23 }
 0x437   : > { %1233 = vrot.lane.b32.xlu0 %v1158_v22, %s2079_s26 }
 0x43a   : > { %1361 = vrot.lane.b32.xlu1 %v1167_v12, %s2090_s17 }
 0x43b   : > { %1265 = vrot.lane.b32.xlu0 %v1166_v23, %s2082_s29 }
 0x43e   : > { %1393 = vrot.lane.b32.xlu1 %v2546_v18, %s2766_s22 }
 0x43f   : > { %1297 = vrot.lane.b32.xlu0 %v2558_v24, %s2765_s21 }
 0x442   : > { %1425 = vrot.lane.b32.xlu1 %v1160_v17, %s2767_s25 }
 0x443   : > { %1329 = vrot.lane.b32.xlu0 %v1159_v14, %s2086_s24 }
 0x446   : > { %1457 = vrot.lane.b32.xlu1 %v1168_v19, %s2089_s23 }
 0x447   : > { %1231 = vrot.lane.b32.xlu0 %v1157_v25, %s2079_s26 }
 0x44a   : > { %1359 = vrot.lane.b32.xlu1 %v1166_v23, %s2090_s17 }
 0x44b   : > { %1263 = vrot.lane.b32.xlu0 %v1165_v26, %s2082_s29 }
 0x44e   : > { %1391 = vrot.lane.b32.xlu1 %v2558_v24, %s2766_s22 }
 0x44f   : > { %1295 = vrot.lane.b32.xlu0 %v2570_v29, %s2765_s21 }
 0x452   : > { %1423 = vrot.lane.b32.xlu1 %v1159_v14, %s2767_s25 }
 0x453   : > { %1327 = vrot.lane.b32.xlu0 %v1158_v22, %s2086_s24 }
 0x456   : > { %1455 = vrot.lane.b32.xlu1 %v1167_v12, %s2089_s23 }
 0x457   : > { %1229 = vrot.lane.b32.xlu0 %v1156_v30, %s2079_s26 }
 0x45a   : > { %1357 = vrot.lane.b32.xlu1 %v1165_v26, %s2090_s17 }
 0x45b   : > { %1261 = vrot.lane.b32.xlu0 %v1164_v32, %s2082_s29  ;;  %s323_s29 = sand.u32 1, %s2068_s10  }
 0x45e   : > { %1389 = vrot.lane.b32.xlu1 %v2570_v29, %s2766_s22 }
 0x45f   : > { %1293 = vrot.lane.b32.xlu0 %v2582_v33, %s2765_s21 }
 0x462   : > { %1421 = vrot.lane.b32.xlu1 %v1158_v22, %s2767_s25 }
 0x463   : > { %1325 = vrot.lane.b32.xlu0 %v1157_v25, %s2086_s24 }
 0x466   : > { %1453 = vrot.lane.b32.xlu1 %v1166_v23, %s2089_s23 }
 0x467   : > { %1291 = vrot.lane.b32.xlu0 %v2590_v16, %s2765_s21 }
 0x46a   : > { %1387 = vrot.lane.b32.xlu1 %v2582_v33, %s2766_s22 }
 0x46b   : > { %1323 = vrot.lane.b32.xlu0 %v1156_v30, %s2086_s24  ;;  %s1782_s24 = sshll.u32 %s323_s29, 3 }
 0x46e   : > { %1451 = vrot.lane.b32.xlu1 %v1165_v26, %s2089_s23 }
 0x46f   : > { %1355 = vrot.lane.b32.xlu0 %v1164_v32, %s2090_s17 }
 0x470   : > { %v1274_v38 = vpop.permute.xlu1 %1273 }
 0x471   : > { %v1242_v40 = vpop.permute.xlu0 %1241 }
 0x472   : > { %v1482_v41 = vsel %vm390_vm0, %v2523_v15, %v1242_v40 }
 0x473   : > { %1419 = vrot.lane.b32.xlu0 %v1157_v25, %s2767_s25  ;;  %v1490_v44 = vsel %vm778_vm6, %v1482_v41, %v1274_v38 }
 0x474   : > { %v1338_v27 = vpop.permute.xlu1 %1337 }
 0x475   : > { %v1306_v45 = vpop.permute.xlu0 %1305 }
 0x476   : > { %v1498_v46 = vsel %vm796_vm8, %v1490_v44, %v1306_v45 }
 0x477   : > { %1547 = vperm.xlu0 %1973, %v1544_v42   ;;  %v1506_v47 = vsel %vm814_vm10, %v1498_v46, %v1338_v27 }
 0x478   : > { %v1370_v28 = vpop.permute.xlu1 %1369 }
 0x479   : > { %v1240_v48 = vpop.permute.xlu0 %1239  ;;  %v1515_v4 = vsel %vm1507_vm13, %v1506_v47, %v1370_v28 }
 0x47a   : > { %v1524_v31 = vsel %vm1516_vm14, %v1515_v4, %v1402_v35  ;;  %v1481_v53 = vsel %vm390_vm0, %v2534_v21, %v1240_v48 }
 0x47b   : > { %v1533_v39 = vsel %vm1525_vm15, %v1524_v31, %v1434_v36 }
 0x47c   : > { %v1368_v43 = vpop.permute.xlu1 %1367  ;;  %v1542_v50 = vsel %vm1534_vm1, %v1533_v39, %v1466_v37 }
 0x47d   : > { %v1272_v49 = vpop.permute.xlu0 %1271  ;;  %1889 = vmatpush3.xpose.msk.msra.mxu1 %vm1550_vm2, %v1542_v50 }
 0x47e   : > { %1890 = vmatprep.subr.mxu1 %v2078_v0  ;;  %v1489_v54 = vsel %vm778_vm6, %v1481_v53, %v1272_v49 }
 0x480   : > { %v1400_v51 = vpop.permute.xlu1 %1399 }
 0x481   : > { %v1304_v52 = vpop.permute.xlu0 %1303 }
 0x482   : > { %v1497_v56 = vsel %vm796_vm8, %v1489_v54, %v1304_v52 }
 0x484   : > { %v1432_v57 = vpop.permute.xlu1 %1431 }
 0x485   : > { %v1336_v55 = vpop.permute.xlu0 %1335 }
 0x486   : > { %v1505_v58 = vsel %vm814_vm10, %v1497_v56, %v1336_v55 }
 0x487   : > { %v1514_v59 = vsel %vm1507_vm13, %v1505_v58, %v1368_v43 }
 0x488   : > { %v1523_v60 = vsel %vm1516_vm14, %v1514_v59, %v1400_v51  ;;  %v1464_v63 = vpop.permute.xlu1 %1463 }
 0x489   : > { %v1532_v1 = vsel %vm1525_vm15, %v1523_v60, %v1432_v57  ;;  %v1238_v3 = vpop.permute.xlu0 %1237 }
 0x48a   : > { %v1541_v5 = vsel %vm1534_vm1, %v1532_v1, %v1464_v63  ;;  %v1480_v7 = vsel %vm390_vm0, %v2546_v18, %v1238_v3 }
 0x48b   : > { %1891 = vmatpush3.xpose.msk.msra.mxu1 %vm1550_vm2, %v1541_v5 }
 0x48c   : > { %1892 = vmatprep.subr.mxu1 %v2078_v0  ;;  %v1366_v6 = vpop.permute.xlu1 %1365 }
 0x48d   : > { %v1270_v9 = vpop.permute.xlu0 %1269 }
 0x48e   : > { %v1488_v8 = vsel %vm778_vm6, %v1480_v7, %v1270_v9 }
 0x490   : > { %v1398_v62 = vpop.permute.xlu1 %1397 }
 0x491   : > { %v1302_v2 = vpop.permute.xlu0 %1301 }
 0x492   : > { %v1496_v10 = vsel %vm796_vm8, %v1488_v8, %v1302_v2 }
 0x494   : > { %v1430_v11 = vpop.permute.xlu1 %1429 }
 0x495   : > { %v1334_v13 = vpop.permute.xlu0 %1333 }
 0x496   : > { %v1504_v15 = vsel %vm814_vm10, %v1496_v10, %v1334_v13 }
 0x497   : > { %v1513_v17 = vsel %vm1507_vm13, %v1504_v15, %v1366_v6 }
 0x498   : > { %v1522_v19 = vsel %vm1516_vm14, %v1513_v17, %v1398_v62  ;;  %v1462_v21 = vpop.permute.xlu1 %1461 }
 0x499   : > { %v1531_v14 = vsel %vm1525_vm15, %v1522_v19, %v1430_v11  ;;  %v1236_v12 = vpop.permute.xlu0 %1235 }
 0x49a   : > { %v1540_v22 = vsel %vm1534_vm1, %v1531_v14, %v1462_v21  ;;  %v1479_v30 = vsel %vm390_vm0, %v2558_v24, %v1236_v12 }
 0x49b   : > { %1893 = vmatpush3.xpose.msk.msra.mxu1 %vm1550_vm2, %v1540_v22 }
 0x49c   : > { %1894 = vmatprep.subr.mxu1 %v2078_v0  ;;  %v1364_v18 = vpop.permute.xlu1 %1363 }
 0x49d   : > { %v1268_v23 = vpop.permute.xlu0 %1267 }
 0x49e   : > { %v1487_v32 = vsel %vm778_vm6, %v1479_v30, %v1268_v23 }
 0x4a0   : > { %v1396_v25 = vpop.permute.xlu1 %1395 }
 0x4a1   : > { %v1300_v26 = vpop.permute.xlu0 %1299 }
 0x4a2   : > { %v1495_v35 = vsel %vm796_vm8, %v1487_v32, %v1300_v26 }
 0x4a4   : > { %v1428_v36 = vpop.permute.xlu1 %1427 }
 0x4a5   : > { %v1332_v37 = vpop.permute.xlu0 %1331 }
 0x4a6   : > { %v1503_v61 = vsel %vm814_vm10, %v1495_v35, %v1332_v37 }
 0x4a7   : > { %v1512_v38 = vsel %vm1507_vm13, %v1503_v61, %v1364_v18 }
 0x4a8   : > { %v1521_v40 = vsel %vm1516_vm14, %v1512_v38, %v1396_v25  ;;  %v1460_v41 = vpop.permute.xlu1 %1459 }
 0x4a9   : > { %v1530_v42 = vsel %vm1525_vm15, %v1521_v40, %v1428_v36  ;;  %v1234_v27 = vpop.permute.xlu0 %1233 }
 0x4aa   : > { %v1539_v44 = vsel %vm1534_vm1, %v1530_v42, %v1460_v41  ;;  %v1478_v47 = vsel %vm390_vm0, %v2570_v29, %v1234_v27 }
 0x4ab   : > { %1895 = vmatpush3.xpose.msk.msra.mxu1 %vm1550_vm2, %v1539_v44 }
 0x4ac   : > { %1896 = vmatprep.subr.mxu1 %v2078_v0  ;;  %v1362_v24 = vpop.permute.xlu1 %1361 }
 0x4ad   : > { %v1266_v45 = vpop.permute.xlu0 %1265 }
 0x4ae   : > { %v1486_v48 = vsel %vm778_vm6, %v1478_v47, %v1266_v45 }
 0x4b0   : > { %v1394_v46 = vpop.permute.xlu1 %1393 }
 0x4b1   : > { %v1298_v28 = vpop.permute.xlu0 %1297 }
 0x4b2   : > { %v1494_v4 = vsel %vm796_vm8, %v1486_v48, %v1298_v28 }
 0x4b4   : > { %v1426_v31 = vpop.permute.xlu1 %1425 }
 0x4b5   : > { %v1330_v39 = vpop.permute.xlu0 %1329 }
 0x4b6   : > { %v1502_v43 = vsel %vm814_vm10, %v1494_v4, %v1330_v39 }
 0x4b7   : > { %v1511_v49 = vsel %vm1507_vm13, %v1502_v43, %v1362_v24 }
 0x4b8   : > { %v1520_v50 = vsel %vm1516_vm14, %v1511_v49, %v1394_v46  ;;  %v1458_v51 = vpop.permute.xlu1 %1457 }
 0x4b9   : > { %v1529_v52 = vsel %vm1525_vm15, %v1520_v50, %v1426_v31  ;;  %v1232_v53 = vpop.permute.xlu0 %1231 }
 0x4ba   : > { %v1538_v54 = vsel %vm1534_vm1, %v1529_v52, %v1458_v51  ;;  %v1477_v58 = vsel %vm390_vm0, %v2582_v33, %v1232_v53 }
 0x4bb   : > { %1897 = vmatpush3.xpose.msk.msra.mxu1 %vm1550_vm2, %v1538_v54 }
 0x4bc   : > { %1898 = vmatprep.subr.mxu1 %v2078_v0  ;;  %v1360_v29 = vpop.permute.xlu1 %1359 }
 0x4bd   : > { %v1264_v56 = vpop.permute.xlu0 %1263 }
 0x4be   : > { %v1485_v59 = vsel %vm778_vm6, %v1477_v58, %v1264_v56  ;;  %v1655_v58 = vld [vmem:[%s2751_s7] sm:$0xff] }
 0x4c0   : > { %v1392_v57 = vpop.permute.xlu1 %1391 }
 0x4c1   : > { %v1296_v55 = vpop.permute.xlu0 %1295 }
 0x4c2   : > { %v1493_v60 = vsel %vm796_vm8, %v1485_v59, %v1296_v55  ;;  %v1656_v59 = vld [vmem:[%s2752_s8] sm:$0xff] }
 0x4c4   : > { %v1424_v63 = vpop.permute.xlu1 %1423 }
 0x4c5   : > { %v1328_v1 = vpop.permute.xlu0 %1327 }
 0x4c6   : > { %v1501_v3 = vsel %vm814_vm10, %v1493_v60, %v1328_v1 }
 0x4c7   : > { %v1510_v5 = vsel %vm1507_vm13, %v1501_v3, %v1360_v29 }
 0x4c8   : > { %v1519_v6 = vsel %vm1516_vm14, %v1510_v5, %v1392_v57  ;;  %v1456_v9 = vpop.permute.xlu1 %1455 }
 0x4c9   : > { %v1528_v62 = vsel %vm1525_vm15, %v1519_v6, %v1424_v63  ;;  %v1230_v2 = vpop.permute.xlu0 %1229 }
 0x4ca   : > { %v1537_v7 = vsel %vm1534_vm1, %v1528_v62, %v1456_v9  ;;  %v1476_v13 = vsel %vm390_vm0, %v2590_v16, %v1230_v2  ;;  %v2015_v16 = vld [vmem:[#allocation2] sm:$0xff] }
 0x4cb   : > { %1899 = vmatpush3.xpose.msk.msra.mxu1 %vm1550_vm2, %v1537_v7  ;;  %v1475_v30 = vsel %vm390_vm0, %v2015_v16, %v2592_v20 }
 0x4cc   : > { %1900 = vmatprep.subr.mxu1 %v2078_v0  ;;  %v1358_v33 = vpop.permute.xlu1 %1357  ;;  %v1483_v35 = vsel %vm778_vm6, %v1475_v30, %v2601_v34  ;;  %v1543_v34 = vld [vmem:[%s2749_s5] sm:$0xff] }
 0x4cd   : > { %v1262_v8 = vpop.permute.xlu0 %1261 }
 0x4ce   : > { %v1484_v15 = vsel %vm778_vm6, %v1476_v13, %v1262_v8 }
 0x4d0   : > { %v1390_v10 = vpop.permute.xlu1 %1389 }
 0x4d1   : > { %v1294_v11 = vpop.permute.xlu0 %1293 }
 0x4d2   : > { %v1492_v17 = vsel %vm796_vm8, %v1484_v15, %v1294_v11 }
 0x4d4   : > { %v1422_v19 = vpop.permute.xlu1 %1421 }
 0x4d5   : > { %v1326_v21 = vpop.permute.xlu0 %1325 }
 0x4d6   : > { %v1500_v14 = vsel %vm814_vm10, %v1492_v17, %v1326_v21 }
 0x4d7   : > { %v1509_v12 = vsel %vm1507_vm13, %v1500_v14, %v1358_v33 }
 0x4d8   : > { %v1518_v22 = vsel %vm1516_vm14, %v1509_v12, %v1390_v10  ;;  %v1454_v18 = vpop.permute.xlu1 %1453 }
 0x4d9   : > { %v1527_v23 = vsel %vm1525_vm15, %v1518_v22, %v1422_v19  ;;  %v1292_v25 = vpop.permute.xlu0 %1291 }
 0x4da   : > { %v1536_v26 = vsel %vm1534_vm1, %v1527_v23, %v1454_v18  ;;  %v1491_v36 = vsel %vm796_vm8, %v1483_v35, %v1292_v25 }
 0x4db   : > { %1901 = vmatpush3.xpose.msk.msra.mxu1 %vm1550_vm2, %v1536_v26 }
 0x4dc   : > { %1902 = vmatprep.subr.mxu1 %v2078_v0  ;;  %v1388_v37 = vpop.permute.xlu1 %1387 }
 0x4dd   : > { %v1324_v32 = vpop.permute.xlu0 %1323 }
 0x4de   : > { %v1499_v61 = vsel %vm814_vm10, %v1491_v36, %v1324_v32 }
 0x4e0   : > { %v1452_v27 = vpop.permute.xlu1 %1451 }
 0x4e1   : > { %v1356_v38 = vpop.permute.xlu0 %1355 }
 0x4e2   : > { %v1508_v40 = vsel %vm1507_vm13, %v1499_v61, %v1356_v38 }
 0x4e3   : > { %v1517_v41 = vsel %vm1516_vm14, %v1508_v40, %v1388_v37 }
 0x4e5   : > { %v1420_v42 = vpop.permute.xlu0 %1419 }
 0x4e6   : > { %v1526_v20 = vsel %vm1525_vm15, %v1517_v41, %v1420_v42 }
 0x4e7   : > { %v1535_v0 = vsel %vm1534_vm1, %v1526_v20, %v1452_v27 }
 0x4e8   : > { %1903 = vmatpush3.xpose.msk.msra.mxu1 %vm1550_vm2, %v1535_v0 }
 0x4eb   : > { %1905 = vmatmul.mubr.msk.f32.vlgmr.msra.gmra.mxu1 %vm1550_vm2, %v1543_v34 }
 0x4f2   : > { %v1548_v44 = vpop.permute.xlu0 %1547 }
 0x5ab   : > { %v1644_v24 = vpop.f32.mrf.mxu1 }
 0x5ac   : > { %v1645_v45 = vadd.f32 %v1644_v24, %v1548_v44 }
 0x5ad   : > { %v1906_v46 = vpop.f32.mrf.mxu1 }
 0x5ae   : > { %v1838_v28 = vmul.f32 -1.442695, %v1645_v45 }
 0x5b0   : > { %2009 = vpow2.f32 %v1838_v28 }
 0x5bd   : > { %v2010_v47 = vpop.eup %2009 }
 0x5be   : > { %v1651_v48 = vadd.f32 1.0, %v2010_v47 }
 0x5c0   : > { %2011 = vrcp.f32 %v1651_v48 }
 0x5cd   : > { %v2012_v4 = vpop.eup %2011 }
 0x5ce   : > { %v1654_v31 = vmul.f32 %v2012_v4, %v1645_v45 }
 0x5d0   : > { %v1657_v39 = vsel %vm1534_vm1, %v1654_v31, 0.0 }
 0x5d1   : > { %1658 = vadd.xlane.f32.xlu1 %v1657_v39 }
 0x5e2   : > { %1694 = vperm.xlu1 %1974, %v1655_v58  }
 0x65a   : > { %v1659_v43 = vpop.xlane.xlu1 %1658 }
 0x65b   : > { %v1660_v49 = vrot.slane %v1659_v43, 4 }
 0x65d   : > { %v1661_v50 = vadd.f32 %v1660_v49, %v1659_v43 }
 0x65e   : > { %v1695_v33 = vpop.permute.xlu1 %1694 }
 0x65f   : > { %v1662_v51 = vrot.slane %v1661_v50, 2 }
 0x661   : > { %v1663_v52 = vadd.f32 %v1662_v51, %v1661_v50 }
 0x663   : > { %v1664_v53 = vrot.slane %v1663_v52, 1 }
 0x665   : > { %v1665_v54 = vadd.f32 %v1664_v53, %v1663_v52 }
 0x667   : > { %1913 = vpush %v1665_v54 }
 0x698   : > { %s1914_s27 = spop %1913 }
 0x699   : > { %s1669_s28 = smul.f32 0.001953125, %s1914_s27  ;;  %s1840_s27 = sshll.u32 %s2165_s13, 7 }
 0x69a   : > { %s1717_s17 = scalar_lea.hbm %s2753_s9, %s1840_s27 }
 0x69b   : > { %v1670_v29 = vstv %s1669_s28  ;;  %s325_s28 = scalar_lea.vmem [#allocation3], %s1782_s24 }
 0x69c   : > { %v1671_v56 = vsub.f32 %v1654_v31, %v1670_v29  ;;  %s1719_s14 = sshll.u32 %s325_s28, 4  ;;  %s1720_s14 = int_to_ptr.vmem [resolvable:$true] %s1719_s14 }
 0x69e   : > { %v1672_v57 = vmul.f32 %v1671_v56, %v1671_v56 }
 0x6a0   : > { %v1673_v55 = vsel %vm1534_vm1, %v1672_v57, 0.0 }
 0x6a1   : > { %1674 = vadd.xlane.f32.xlu0 %v1673_v55 }
 0x6b7   : > { %1700 = vperm.xlu0 %1973, %v1656_v59  }
 0x72a   : > { %v1675_v60 = vpop.xlane.xlu0 %1674 }
 0x72b   : > { %v1676_v63 = vrot.slane %v1675_v60, 4 }
 0x72d   : > { %v1677_v1 = vadd.f32 %v1676_v63, %v1675_v60 }
 0x72f   : > { %v1678_v3 = vrot.slane %v1677_v1, 2 }
 0x731   : > { %v1679_v5 = vadd.f32 %v1678_v3, %v1677_v1 }
 0x732   : > { %v1701_v11 = vpop.permute.xlu0 %1700 }
 0x733   : > { %v1680_v6 = vrot.slane %v1679_v5, 1 }
 0x735   : > { %v1681_v9 = vadd.f32 %v1680_v6, %v1679_v5 }
 0x737   : > { %1915 = vpush %v1681_v9 }
 0x768   : > { %s1916_s22 = spop %1915 }
 0x769   : > { %s1685_s25 = smul.f32 0.001953125, %s1916_s22  ;;  %s1706_s22 = scalar_lea.sflag [#allocation4], %s323_s29 }
 0x76b   : > { %s1686_s26 = sadd.f32 1e-05, %s1685_s25  ;;  %s2016_s25 = scalar_lea.vmem %s1720_s14, 128 }
 0x76c   : > { %p2017_p11 = scmp.ne.s32.totalorder %s1720_s14, %s2016_s25 }
 0x76d   : > { %v1687_v62 = vstv %s1686_s26  ;;  %s2093_s26 = smov [#allocation3]  }
 0x76e   : > { %2013 = vrsqrt.f32 %v1687_v62  ;;  %p2018_p12 = pnand %p2017_p11, %p2182_p5  ;;  %s2020_s13 = sshll.u32 %s2093_s26, 4  ;;  %s2021_s13 = int_to_ptr.vmem [resolvable:$false] %s2020_s13 }
 0x76f   : > { %s2022_s24 = scalar_lea.vmem %s2021_s13, 256  ;;  %p2023_p0 = scmp.lt.s32.totalorder %s1720_s14, %s2021_s13 }
 0x770   : > { %p2019_p13 = pneg %p2018_p12  ;;  %p2024_p1 = scmp.lt.s32.totalorder %s2022_s24, %s2016_s25 }
 0x772   : > { %p2025_p2 = por %p2024_p1, %p2023_p0 }
 0x774   : > { %p2026_p3 = pnand %p2025_p2, %p2019_p13 }
 0x77b   : > { %v2014_v2 = vpop.eup %2013 }
 0x77c   : > { %1917 = vpush %v2014_v2 }
 0x7ad   : > { %s1918_s23 = spop %1917 }
 0x7ae   : > { %v1690_v7 = vstv %s1918_s23 }
 0x7af   : > { %v1691_v8 = vmul.f32 %v1690_v7, %v1671_v56 }
 0x7b1   : > { %v1697_v10 = vmul.f32 %v1695_v33, %v1691_v8 }
 0x7b3   : > { %v1703_v13 = vadd.f32 %v1701_v11, %v1697_v10 }
 0x7b5   : > { %1704 = vst.msk [vmem:[%s325_s28] sm:$0xff] %vm1534_vm1, %v1703_v13 }
 0x7b6   : > { %2029 = shalt.err (!%p2026_p3)
}
 0x7b7   : > { %s2030_s23 = scalar_lea.hbm %s1717_s17, 128  ;;  %s2034_s28 = scalar_lea.hbm %s2753_s9, 256 }
 0x7b8   : > { %p2031_p4 = scmp.ne.s32.totalorder %s1717_s17, %s2030_s23  ;;  %p2035_p9 = scmp.lt.s32.totalorder %s1717_s17, %s2753_s9 }
 0x7b9   : > { %p2036_p10 = scmp.lt.s32.totalorder %s2034_s28, %s2030_s23 }
 0x7ba   : > { %p2032_p7 = pnand %p2031_p4, %p2182_p5 }
 0x7bb   : > { %p2037_p11 = por %p2036_p10, %p2035_p9 }
 0x7bc   : > { %p2033_p8 = pneg %p2032_p7 }
 0x7be   : > { %p2038_p12 = pnand %p2037_p11, %p2033_p8 }
 0x7c0   : > { %2041 = shalt.err (!%p2038_p12)
}
 0x7c1   : > { %1919 = dma.vmem_to_hbm [thread:$0]  (%p2182_p5), %s1720_s14, 128, %s1717_s17, %s1706_s22  }
 0x7c2 PF: > { %p1925_p13 = scmp.ge.s32.totalorder %s2076_s12, 2  ;;  %s1731_s25 = sand.u32 1, %s2064_s30  }
 0x7c3   : > { %s1732_s26 = scalar_lea.sflag [#allocation4], %s1731_s25 }
 0x7c4   : > { %p1922_p0 = pnand %p1925_p13, %p2186_p6 }
 0x7c6   : > { %p1923_p1 = pneg %p1922_p0 }
 0x7c8   : > { %2059 = dma.done.wait (%p1923_p1), %s1732_s26, 128  }
 0x7c9   : > { %2061 = vsyncadd (%p1923_p1), %s1732_s26, 4294967168  ;;  %p19_p2 = scmp.ge.s32.totalorder %s2169_s15, 4   ;;  %s2768_s30 = smov %s2068_s10 }
 0x7ca   : > { %s2769_s10 = smov %s2072_s11  ;;  %s2770_s11 = smov %s2180_s18 }
 0x7cb   : > { %s2771_s12 = smov %s2169_s15  ;;  %21 = sbr.rel (!%p19_p2) target bundleno = 3 (0x3), region = 97 }
 0x7d0   :  { %1737 = vsyncpa [#allocation4], 1 }
 0x7d1   :  { %1739 = vsyncpa [#allocation4 + $0x1], 1 }

</bundles_post_ra>
